<compile_context>
chip_gen: v6e
topology: v6e:2x2x1
jax: 0.10.0
libtpu: 0.0.40
codegen_flags: <defaults>
</compile_context>

<pallas_src>
from functools import partial

import numpy as np
import jax
import jax.numpy as jnp
from jax import lax
from jax.experimental import pallas as pl
from jax.experimental.pallas import tpu as pltpu


# ----------------------------------------------------------------------------
# Pallas kernel: whole forward pass for one small padded [S, Bp, *] problem.
# ----------------------------------------------------------------------------
def lstm_net_kernel(priv_ref, legal_ref, action_ref, h0_ref, c0_ref,
                    wff_ref, bff_ref, wih_ref, whh_ref, bg_ref,
                    wav_ref, bav_ref,
                    qa_ref, ga_ref, q_ref, o_ref,
                    seq_ref,
                    *, seq_len, num_layers, hid_dim, out_dim, real_batch):
    S = seq_len
    L = num_layers
    H = hid_dim
    A = out_dim
    G = 4 * H                                # gate width; == 128 lanes at H=32
    Bp = action_ref.shape[1]                 # padded (sublane-tile) batch
    bf16 = jnp.bfloat16
    f32 = jnp.float32

    # ---- FF stack (self.net) for the whole padded sequence: ONE matmul -----
    # wff/bff are zero-padded H->G columns in the wrapper, so lanes H: are 0.
    x = jnp.maximum(
        jnp.dot(priv_ref[...].astype(bf16), wff_ref[...],
                preferred_element_type=f32) + bff_ref[...], 0.0)   # [S*Bp, G]

    # ---- Stacked LSTM, layer-major ------------------------------------------
    # Per layer: one hoisted input->gates matmul over all timesteps, then a
    # fully-unrolled recurrence with only h @ whh on the serial path.
    # TODO(synk): if S grows or becomes dynamic, switch the unrolled Python
    # loop to chunked lax.fori_loop(..., unroll=True) with (h, c) carries.
    layer_in = x
    for l in range(L):
        gx = (jnp.dot(layer_in.astype(bf16), wih_ref[l],
                      preferred_element_type=f32) + bg_ref[l])     # [S*Bp, G]
        whh_l = whh_ref[l]                   # [G, G] bf16, rows H: are zero
        h = h0_ref[l]                        # [Bp, G] f32, real state in lanes :H
        c = c0_ref[l]                        # [Bp, G]
        dst = o_ref if l == L - 1 else seq_ref   # last layer writes o directly
        for t in range(S):                   # fully unrolled (S small & static)
            # Static, sublane-tile-aligned slab slice (Bp == 8).
            gates = (gx[t * Bp:(t + 1) * Bp, :]
                     + jnp.dot(h.astype(bf16), whh_l,
                               preferred_element_type=f32))        # [Bp, G]
            # PyTorch gate layout along lanes: [ i | f | g | o ].
            # Whole-vreg nonlinearities (2 EUP pushes) + XLU lane rotates to
            # align f/g/o onto the i quarter; no sub-lane slicing on this path.
            sg = jax.nn.sigmoid(gates)
            tg = jnp.tanh(gates)
            f_al = pltpu.roll(sg, G - H, axis=1)      # f quarter -> lanes :H
            g_al = pltpu.roll(tg, G - 2 * H, axis=1)  # g quarter -> lanes :H
            o_al = pltpu.roll(sg, G - 3 * H, axis=1)  # o quarter -> lanes :H
            c = f_al * c + sg * g_al                  # real cell state in lanes :H
            h = o_al * jnp.tanh(c)                    # real hidden in lanes :H
            dst[pl.ds(t * Bp, Bp), :] = h             # aligned (8,128) store
        if l + 1 < L:
            layer_in = seq_ref[...]                   # [S*Bp, G] for next layer

    # ---- Dueling heads: one merged, zero-padded [G, A+1] matmul -------------
    o_flat = o_ref[...]                               # [S*Bp, G]
    heads = (jnp.dot(o_flat.astype(bf16), wav_ref[...],
                     preferred_element_type=f32) + bav_ref[...])   # [S*Bp, A+1]
    a_all = heads[:, :A].reshape(S, Bp, A)
    v_all = heads[:, A:A + 1].reshape(S, Bp, 1)
    legal = legal_ref[...]                            # [S, Bp, A]
    q_all = v_all + a_all * legal                     # duel()
    q_ref[...] = q_all

    # qa = q.gather(2, action.unsqueeze(2)).squeeze(2) via one-hot reduction.
    act = action_ref[...]                             # [S, Bp] int32
    idx_a = lax.broadcasted_iota(jnp.int32, (S, Bp, A), 2)
    onehot = (idx_a == act[:, :, None]).astype(q_all.dtype)
    qa_ref[...] = jnp.sum(q_all * onehot, axis=2)

    # legal_q = (1 + q - q.min()) * legal_move ; greedy_action = argmax(., 2).
    # Padded batch rows MUST be excluded from the global min (correctness).
    idx_b = lax.broadcasted_iota(jnp.int32, (S, Bp, A), 1)
    qmin = jnp.min(jnp.where(idx_b < real_batch, q_all, jnp.inf))
    legal_q = (1.0 + q_all - qmin) * legal
    max_lq = jnp.max(legal_q, axis=2, keepdims=True)
    # first-occurrence argmax: min index among positions achieving the max
    cand = jnp.where(legal_q == max_lq, idx_a, jnp.int32(A))
    ga_ref[...] = jnp.min(cand, axis=2).astype(jnp.int32)
    # TODO(synk): final LSTM state (h_n, c_n) is not emitted; the module's
    # forward() also discards it.  Add outputs if state carry is ever needed.


# ----------------------------------------------------------------------------
# Wrapper: one-time weight fusion / padding, batch padding, one pallas_call,
# then un-padding (all free XLA layout plumbing under jit).
# ----------------------------------------------------------------------------
@jax.jit
def lstm_net_forward(priv_s, legal_move, action, h0, c0, params):
    S, B, in_dim = priv_s.shape
    A = legal_move.shape[-1]
    L, _, H = h0.shape
    G = 4 * H
    Bp = max(8, ((B + 7) // 8) * 8)          # pad batch to the f32 sublane tile
    bf16 = jnp.bfloat16

    # --- parameter fusion & H->G zero padding (outside the kernel) ----------
    pad_h = (0, G - H)
    wff = jnp.pad(params['wff'], ((0, 0), pad_h)).astype(bf16)           # [IN, G]
    bff = jnp.pad(params['bff'], ((0, 0), pad_h))                        # [1, G]
    wih = jnp.pad(params['wih'], ((0, 0), pad_h, (0, 0))).astype(bf16)   # [L, G, G]
    whh = jnp.pad(params['whh'], ((0, 0), pad_h, (0, 0))).astype(bf16)   # [L, G, G]
    bg = params['bih'] + params['bhh']                                   # [L, 1, G]
    wav = jnp.pad(jnp.concatenate([params['wa'], params['wv']], axis=1),
                  (pad_h, (0, 0))).astype(bf16)                          # [G, A+1]
    bav = jnp.concatenate([params['ba'], params['bv']], axis=1)          # [1, A+1]

    # --- batch padding; priv flattened to a lane/sublane-friendly slab ------
    pad_b = (0, Bp - B)
    priv_p = jnp.pad(priv_s, ((0, 0), pad_b, (0, 0))).reshape(S * Bp, in_dim)
    legal_p = jnp.pad(legal_move, ((0, 0), pad_b, (0, 0)))
    action_p = jnp.pad(action, ((0, 0), pad_b))
    h0_p = jnp.pad(h0, ((0, 0), pad_b, pad_h))                           # [L, Bp, G]
    c0_p = jnp.pad(c0, ((0, 0), pad_b, pad_h))

    kernel = partial(lstm_net_kernel, seq_len=S, num_layers=L,
                     hid_dim=H, out_dim=A, real_batch=B)

    inputs = (priv_p, legal_p, action_p, h0_p, c0_p,
              wff, bff, wih, whh, bg, wav, bav)
    vmem = pl.BlockSpec(memory_space=pltpu.MemorySpace.VMEM)

    out_shapes = (
        jax.ShapeDtypeStruct((S, Bp), jnp.float32),      # qa   (batch-padded)
        jax.ShapeDtypeStruct((S, Bp), jnp.int32),        # greedy_action (padded)
        jax.ShapeDtypeStruct((S, Bp, A), jnp.float32),   # q    (batch-padded)
        jax.ShapeDtypeStruct((S * Bp, G), jnp.float32),  # o    (lane-dense slab)
    )

    # TODO(synk): for a real RL batch, add a leading batch grid axis with
    # dimension_semantics=("parallel", ...) so v7x's two TensorCores split the
    # work, and re-derive hoisted-slab tiling / vmem_limit_bytes for v7x's
    # 64 MiB VMEM and v5e's 16 MiB default scoped limit.  At ~100 KiB total
    # footprint (S=8, Bp=8, H=32) it is moot.
    qa_p, ga_p, q_p, o_p = pl.pallas_call(
        kernel,
        out_shape=out_shapes,
        in_specs=[vmem] * len(inputs),
        out_specs=tuple([vmem] * len(out_shapes)),
        scratch_shapes=[pltpu.VMEM((S * Bp, G), jnp.float32)],
    )(*inputs)

    # Un-pad / re-layout in the wrapper (free XLA layout plumbing).
    qa = qa_p[:, :B]
    greedy_action = ga_p[:, :B]
    q = q_p[:, :B, :]
    o = o_p.reshape(S, Bp, G)[:, :B, :H]
    return qa, greedy_action, q, o


# ----------------------------------------------------------------------------
# Deterministic parameter init (uniform(-1/sqrt(fan_in), 1/sqrt(fan_in)),
# matching the PyTorch default init scheme in distribution, not values).
# ----------------------------------------------------------------------------
def init_params(key, in_dim, hid_dim, out_dim, num_layers):
    keys = jax.random.split(key, 10)

    def u(k, shape, fan_in):
        bound = 1.0 / float(np.sqrt(fan_in))
        return jax.random.uniform(k, shape, jnp.float32, -bound, bound)

    return dict(
        wff=u(keys[0], (in_dim, hid_dim), in_dim),
        bff=u(keys[1], (1, hid_dim), in_dim),
        wih=u(keys[2], (num_layers, hid_dim, 4 * hid_dim), hid_dim),
        whh=u(keys[3], (num_layers, hid_dim, 4 * hid_dim), hid_dim),
        bih=u(keys[4], (num_layers, 1, 4 * hid_dim), hid_dim),
        bhh=u(keys[5], (num_layers, 1, 4 * hid_dim), hid_dim),
        wa=u(keys[6], (hid_dim, out_dim), hid_dim),
        ba=u(keys[7], (1, out_dim), hid_dim),
        wv=u(keys[8], (hid_dim, 1), hid_dim),
        bv=u(keys[9], (1, 1), hid_dim),
    )


# ----------------------------------------------------------------------------
# Pure-JAX reference (mirrors the PyTorch forward).  Matmul operands are cast
# to bf16 with f32 accumulation to mirror the kernel's TPU-standard precision
# policy; all other math is f32.
# ----------------------------------------------------------------------------
def reference_forward(priv_s, legal_move, action, h0, c0, p):
    def mm(x, w):
        return jnp.dot(x.astype(jnp.bfloat16), w.astype(jnp.bfloat16),
                       preferred_element_type=jnp.float32)

    S, B, _ = priv_s.shape
    L, _, H = h0.shape
    x = jnp.maximum(mm(priv_s.reshape(S * B, -1), p['wff']) + p['bff'],
                    0.0).reshape(S, B, H)
    h, c = h0, c0
    outs = []
    for t in range(S):
        inp = x[t]
        new_h, new_c = [], []
        for l in range(L):
            gates = (mm(inp, p['wih'][l]) + p['bih'][l][0]
                     + mm(h[l], p['whh'][l]) + p['bhh'][l][0])
            i = jax.nn.sigmoid(gates[:, :H])
            f = jax.nn.sigmoid(gates[:, H:2 * H])
            g = jnp.tanh(gates[:, 2 * H:3 * H])
            o = jax.nn.sigmoid(gates[:, 3 * H:])
            cn = f * c[l] + i * g
            hn = o * jnp.tanh(cn)
            new_h.append(hn)
            new_c.append(cn)
            inp = hn
        h, c = jnp.stack(new_h), jnp.stack(new_c)
        outs.append(inp)
    o_seq = jnp.stack(outs)
    a = mm(o_seq.reshape(S * B, H), p['wa']).reshape(S, B, -1) + p['ba'][0]
    v = mm(o_seq.reshape(S * B, H), p['wv']).reshape(S, B, -1) + p['bv'][0]
    q = v + a * legal_move
    qa = jnp.take_along_axis(q, action[..., None], axis=2)[..., 0]
    legal_q = (1.0 + q - q.min()) * legal_move
    ga = jnp.argmax(legal_q, axis=2).astype(jnp.int32)
    return qa, ga, q, o_seq


if __name__ == "__main__":
    S, B, IN_DIM, HID, OUT, NLAYER = 8, 2, 16, 32, 8, 2

    key = jax.random.PRNGKey(0)
    k1, k2, k3, k4, k5, kp = jax.random.split(key, 6)

    priv_s = jax.random.normal(k1, (S, B, IN_DIM), jnp.float32)
    legal_move = (jax.random.uniform(k2, (S, B, OUT)) > 0.3).astype(jnp.float32)
    legal_move = legal_move.at[:, :, 0].set(1.0)   # at least one legal action
    action = jax.random.randint(k3, (S, B), 0, OUT, jnp.int32)
    h0 = 0.1 * jax.random.normal(k4, (NLAYER, B, HID), jnp.float32)
    c0 = 0.1 * jax.random.normal(k5, (NLAYER, B, HID), jnp.float32)

    params = init_params(kp, IN_DIM, HID, OUT, NLAYER)

    qa, ga, q, o = lstm_net_forward(priv_s, legal_move, action, h0, c0, params)
    jax.block_until_ready((qa, ga, q, o))

    qa_r, ga_r, q_r, o_r = reference_forward(priv_s, legal_move, action, h0, c0, params)
    np.testing.assert_allclose(np.asarray(o), np.asarray(o_r), rtol=2e-3, atol=1e-3)
    np.testing.assert_allclose(np.asarray(q), np.asarray(q_r), rtol=2e-3, atol=1e-3)
    np.testing.assert_allclose(np.asarray(qa), np.asarray(qa_r), rtol=2e-3, atol=1e-3)

    ga_np, ga_ref_np = np.asarray(ga), np.asarray(ga_r)
    if not np.array_equal(ga_np, ga_ref_np):
        # Allow mismatches only on near-ties of legal_q (bf16-level numerics).
        lq = np.asarray((1.0 + q_r - q_r.min()) * legal_move)
        top2 = np.sort(lq, axis=2)[..., -2:]
        gap = top2[..., 1] - top2[..., 0]
        mism = ga_np != ga_ref_np
        assert float(gap[mism].max()) < 1e-3, \
            "greedy_action mismatch beyond argmax tie tolerance"

    print("KERNEL_OK")
</pallas_src>

<mosaic_0001>
module attributes {stable_mosaic.version = 11 : i64} {
  func.func @lstm_net_kernel(%arg0: memref<64x16xf32, #tpu.memory_space<vmem>>, %arg1: memref<8x8x8xf32, #tpu.memory_space<vmem>>, %arg2: memref<8x8xi32, #tpu.memory_space<vmem>>, %arg3: memref<2x8x128xf32, #tpu.memory_space<vmem>>, %arg4: memref<2x8x128xf32, #tpu.memory_space<vmem>>, %arg5: memref<16x128xbf16, #tpu.memory_space<vmem>>, %arg6: memref<1x128xf32, #tpu.memory_space<vmem>>, %arg7: memref<2x128x128xbf16, #tpu.memory_space<vmem>>, %arg8: memref<2x128x128xbf16, #tpu.memory_space<vmem>>, %arg9: memref<2x1x128xf32, #tpu.memory_space<vmem>>, %arg10: memref<128x9xbf16, #tpu.memory_space<vmem>>, %arg11: memref<1x9xf32, #tpu.memory_space<vmem>>, %arg12: memref<8x8xf32, #tpu.memory_space<vmem>>, %arg13: memref<8x8xi32, #tpu.memory_space<vmem>>, %arg14: memref<8x8x8xf32, #tpu.memory_space<vmem>>, %arg15: memref<64x128xf32, #tpu.memory_space<vmem>>, %arg16: memref<64x128xf32, #tpu.memory_space<vmem>>) attributes {dimension_semantics = [], scalar_prefetch = 0 : i64, scratch_operands = 1 : i64, tpu.core_type = #tpu.core_type<tc>} {
    %c0 = arith.constant 0 : index
    %c0_0 = arith.constant 0 : index
    %0 = vector.load %arg0[%c0, %c0_0] : memref<64x16xf32, #tpu.memory_space<vmem>>, vector<64x16xf32>
    %1 = arith.truncf %0 : vector<64x16xf32> to vector<64x16xbf16>
    %c0_1 = arith.constant 0 : index
    %c0_2 = arith.constant 0 : index
    %2 = vector.load %arg5[%c0_1, %c0_2] : memref<16x128xbf16, #tpu.memory_space<vmem>>, vector<16x128xbf16>
    %cst = arith.constant dense<0.000000e+00> : vector<64x128xf32>
    %3 = tpu.matmul %1, %2, %cst {dimension_numbers = #tpu.dot_dimension_numbers<[1], [0], [0], [1], [0, 0, 1, 1], [], []>} : vector<64x16xbf16>, vector<16x128xbf16>, vector<64x128xf32> -> vector<64x128xf32>
    %c0_3 = arith.constant 0 : index
    %c0_4 = arith.constant 0 : index
    %4 = vector.load %arg6[%c0_3, %c0_4] : memref<1x128xf32, #tpu.memory_space<vmem>>, vector<1x128xf32>
    %5 = vector.broadcast %4 : vector<1x128xf32> to vector<64x128xf32>
    %6 = arith.addf %3, %5 : vector<64x128xf32>
    %cst_5 = arith.constant 0.000000e+00 : f32
    %7 = vector.broadcast %cst_5 : f32 to vector<64x128xf32>
    %8 = arith.maximumf %6, %7 : vector<64x128xf32>
    %9 = arith.truncf %8 : vector<64x128xf32> to vector<64x128xbf16>
    %c0_6 = arith.constant 0 : index
    %c0_7 = arith.constant 0 : index
    %c0_8 = arith.constant 0 : index
    %10 = vector.load %arg7[%c0_6, %c0_7, %c0_8] : memref<2x128x128xbf16, #tpu.memory_space<vmem>>, vector<1x128x128xbf16>
    %11 = vector.shape_cast %10 : vector<1x128x128xbf16> to vector<128x128xbf16>
    %cst_9 = arith.constant dense<0.000000e+00> : vector<64x128xf32>
    %12 = tpu.matmul %9, %11, %cst_9 {dimension_numbers = #tpu.dot_dimension_numbers<[1], [0], [0], [1], [0, 0, 1, 1], [], []>} : vector<64x128xbf16>, vector<128x128xbf16>, vector<64x128xf32> -> vector<64x128xf32>
    %c0_10 = arith.constant 0 : index
    %c0_11 = arith.constant 0 : index
    %c0_12 = arith.constant 0 : index
    %13 = vector.load %arg9[%c0_10, %c0_11, %c0_12] : memref<2x1x128xf32, #tpu.memory_space<vmem>>, vector<1x1x128xf32>
    %14 = vector.shape_cast %13 : vector<1x1x128xf32> to vector<1x128xf32>
    %15 = vector.broadcast %14 : vector<1x128xf32> to vector<64x128xf32>
    %16 = arith.addf %12, %15 : vector<64x128xf32>
    %c0_13 = arith.constant 0 : index
    %c0_14 = arith.constant 0 : index
    %c0_15 = arith.constant 0 : index
    %17 = vector.load %arg8[%c0_13, %c0_14, %c0_15] : memref<2x128x128xbf16, #tpu.memory_space<vmem>>, vector<1x128x128xbf16>
    %18 = vector.shape_cast %17 : vector<1x128x128xbf16> to vector<128x128xbf16>
    %c0_16 = arith.constant 0 : index
    %c0_17 = arith.constant 0 : index
    %c0_18 = arith.constant 0 : index
    %19 = vector.load %arg3[%c0_16, %c0_17, %c0_18] : memref<2x8x128xf32, #tpu.memory_space<vmem>>, vector<1x8x128xf32>
    %20 = vector.shape_cast %19 : vector<1x8x128xf32> to vector<8x128xf32>
    %c0_19 = arith.constant 0 : index
    %c0_20 = arith.constant 0 : index
    %c0_21 = arith.constant 0 : index
    %21 = vector.load %arg4[%c0_19, %c0_20, %c0_21] : memref<2x8x128xf32, #tpu.memory_space<vmem>>, vector<1x8x128xf32>
    %22 = vector.shape_cast %21 : vector<1x8x128xf32> to vector<8x128xf32>
    %23 = vector.extract_strided_slice %16 {offsets = [0, 0], sizes = [8, 128], strides = [1, 1]} : vector<64x128xf32> to vector<8x128xf32>
    %24 = arith.truncf %20 : vector<8x128xf32> to vector<8x128xbf16>
    %cst_22 = arith.constant dense<0.000000e+00> : vector<8x128xf32>
    %25 = tpu.matmul %24, %18, %cst_22 {dimension_numbers = #tpu.dot_dimension_numbers<[1], [0], [0], [1], [0, 0, 1, 1], [], []>} : vector<8x128xbf16>, vector<128x128xbf16>, vector<8x128xf32> -> vector<8x128xf32>
    %26 = arith.addf %23, %25 : vector<8x128xf32>
    %27 = arith.negf %26 : vector<8x128xf32>
    %28 = math.exp %27 : vector<8x128xf32>
    %cst_23 = arith.constant 1.000000e+00 : f32
    %29 = vector.broadcast %cst_23 : f32 to vector<8x128xf32>
    %30 = arith.addf %29, %28 : vector<8x128xf32>
    %31 = arith.divf %29, %30 : vector<8x128xf32>
    %32 = math.tanh %26 : vector<8x128xf32>
    %c96_i32 = arith.constant 96 : i32
    %33 = tpu.dynamic_rotate %31 by %c96_i32 dim 1 : vector<8x128xf32>, i32 -> vector<8x128xf32>
    %c64_i32 = arith.constant 64 : i32
    %34 = tpu.dynamic_rotate %32 by %c64_i32 dim 1 : vector<8x128xf32>, i32 -> vector<8x128xf32>
    %c32_i32 = arith.constant 32 : i32
    %35 = tpu.dynamic_rotate %31 by %c32_i32 dim 1 : vector<8x128xf32>, i32 -> vector<8x128xf32>
    %36 = arith.mulf %33, %22 : vector<8x128xf32>
    %37 = arith.mulf %31, %34 : vector<8x128xf32>
    %38 = arith.addf %36, %37 : vector<8x128xf32>
    %39 = math.tanh %38 : vector<8x128xf32>
    %40 = arith.mulf %35, %39 : vector<8x128xf32>
    %c0_24 = arith.constant 0 : index
    %c0_25 = arith.constant 0 : index
    %41 = vector.load %arg16[%c0_24, %c0_25] : memref<64x128xf32, #tpu.memory_space<vmem>>, vector<8x128xf32>
    tpu.vector_store %arg16[%c0_24, %c0_25], %40 {strides = array<i32>} : memref<64x128xf32, #tpu.memory_space<vmem>>, vector<8x128xf32>,
    %42 = vector.extract_strided_slice %16 {offsets = [8, 0], sizes = [8, 128], strides = [1, 1]} : vector<64x128xf32> to vector<8x128xf32>
    %43 = arith.truncf %40 : vector<8x128xf32> to vector<8x128xbf16>
    %cst_26 = arith.constant dense<0.000000e+00> : vector<8x128xf32>
    %44 = tpu.matmul %43, %18, %cst_26 {dimension_numbers = #tpu.dot_dimension_numbers<[1], [0], [0], [1], [0, 0, 1, 1], [], []>} : vector<8x128xbf16>, vector<128x128xbf16>, vector<8x128xf32> -> vector<8x128xf32>
    %45 = arith.addf %42, %44 : vector<8x128xf32>
    %46 = arith.negf %45 : vector<8x128xf32>
    %47 = math.exp %46 : vector<8x128xf32>
    %cst_27 = arith.constant 1.000000e+00 : f32
    %48 = vector.broadcast %cst_27 : f32 to vector<8x128xf32>
    %49 = arith.addf %48, %47 : vector<8x128xf32>
    %50 = arith.divf %48, %49 : vector<8x128xf32>
    %51 = math.tanh %45 : vector<8x128xf32>
    %c96_i32_28 = arith.constant 96 : i32
    %52 = tpu.dynamic_rotate %50 by %c96_i32_28 dim 1 : vector<8x128xf32>, i32 -> vector<8x128xf32>
    %c64_i32_29 = arith.constant 64 : i32
    %53 = tpu.dynamic_rotate %51 by %c64_i32_29 dim 1 : vector<8x128xf32>, i32 -> vector<8x128xf32>
    %c32_i32_30 = arith.constant 32 : i32
    %54 = tpu.dynamic_rotate %50 by %c32_i32_30 dim 1 : vector<8x128xf32>, i32 -> vector<8x128xf32>
    %55 = arith.mulf %52, %38 : vector<8x128xf32>
    %56 = arith.mulf %50, %53 : vector<8x128xf32>
    %57 = arith.addf %55, %56 : vector<8x128xf32>
    %58 = math.tanh %57 : vector<8x128xf32>
    %59 = arith.mulf %54, %58 : vector<8x128xf32>
    %c8 = arith.constant 8 : index
    %c0_31 = arith.constant 0 : index
    %60 = vector.load %arg16[%c8, %c0_31] : memref<64x128xf32, #tpu.memory_space<vmem>>, vector<8x128xf32>
    tpu.vector_store %arg16[%c8, %c0_31], %59 {strides = array<i32>} : memref<64x128xf32, #tpu.memory_space<vmem>>, vector<8x128xf32>,
    %61 = vector.extract_strided_slice %16 {offsets = [16, 0], sizes = [8, 128], strides = [1, 1]} : vector<64x128xf32> to vector<8x128xf32>
    %62 = arith.truncf %59 : vector<8x128xf32> to vector<8x128xbf16>
    %cst_32 = arith.constant dense<0.000000e+00> : vector<8x128xf32>
    %63 = tpu.matmul %62, %18, %cst_32 {dimension_numbers = #tpu.dot_dimension_numbers<[1], [0], [0], [1], [0, 0, 1, 1], [], []>} : vector<8x128xbf16>, vector<128x128xbf16>, vector<8x128xf32> -> vector<8x128xf32>
    %64 = arith.addf %61, %63 : vector<8x128xf32>
    %65 = arith.negf %64 : vector<8x128xf32>
    %66 = math.exp %65 : vector<8x128xf32>
    %cst_33 = arith.constant 1.000000e+00 : f32
    %67 = vector.broadcast %cst_33 : f32 to vector<8x128xf32>
    %68 = arith.addf %67, %66 : vector<8x128xf32>
    %69 = arith.divf %67, %68 : vector<8x128xf32>
    %70 = math.tanh %64 : vector<8x128xf32>
    %c96_i32_34 = arith.constant 96 : i32
    %71 = tpu.dynamic_rotate %69 by %c96_i32_34 dim 1 : vector<8x128xf32>, i32 -> vector<8x128xf32>
    %c64_i32_35 = arith.constant 64 : i32
    %72 = tpu.dynamic_rotate %70 by %c64_i32_35 dim 1 : vector<8x128xf32>, i32 -> vector<8x128xf32>
    %c32_i32_36 = arith.constant 32 : i32
    %73 = tpu.dynamic_rotate %69 by %c32_i32_36 dim 1 : vector<8x128xf32>, i32 -> vector<8x128xf32>
    %74 = arith.mulf %71, %57 : vector<8x128xf32>
    %75 = arith.mulf %69, %72 : vector<8x128xf32>
    %76 = arith.addf %74, %75 : vector<8x128xf32>
    %77 = math.tanh %76 : vector<8x128xf32>
    %78 = arith.mulf %73, %77 : vector<8x128xf32>
    %c16 = arith.constant 16 : index
    %c0_37 = arith.constant 0 : index
    %79 = vector.load %arg16[%c16, %c0_37] : memref<64x128xf32, #tpu.memory_space<vmem>>, vector<8x128xf32>
    tpu.vector_store %arg16[%c16, %c0_37], %78 {strides = array<i32>} : memref<64x128xf32, #tpu.memory_space<vmem>>, vector<8x128xf32>,
    %80 = vector.extract_strided_slice %16 {offsets = [24, 0], sizes = [8, 128], strides = [1, 1]} : vector<64x128xf32> to vector<8x128xf32>
    %81 = arith.truncf %78 : vector<8x128xf32> to vector<8x128xbf16>
    %cst_38 = arith.constant dense<0.000000e+00> : vector<8x128xf32>
    %82 = tpu.matmul %81, %18, %cst_38 {dimension_numbers = #tpu.dot_dimension_numbers<[1], [0], [0], [1], [0, 0, 1, 1], [], []>} : vector<8x128xbf16>, vector<128x128xbf16>, vector<8x128xf32> -> vector<8x128xf32>
    %83 = arith.addf %80, %82 : vector<8x128xf32>
    %84 = arith.negf %83 : vector<8x128xf32>
    %85 = math.exp %84 : vector<8x128xf32>
    %cst_39 = arith.constant 1.000000e+00 : f32
    %86 = vector.broadcast %cst_39 : f32 to vector<8x128xf32>
    %87 = arith.addf %86, %85 : vector<8x128xf32>
    %88 = arith.divf %86, %87 : vector<8x128xf32>
    %89 = math.tanh %83 : vector<8x128xf32>
    %c96_i32_40 = arith.constant 96 : i32
    %90 = tpu.dynamic_rotate %88 by %c96_i32_40 dim 1 : vector<8x128xf32>, i32 -> vector<8x128xf32>
    %c64_i32_41 = arith.constant 64 : i32
    %91 = tpu.dynamic_rotate %89 by %c64_i32_41 dim 1 : vector<8x128xf32>, i32 -> vector<8x128xf32>
    %c32_i32_42 = arith.constant 32 : i32
    %92 = tpu.dynamic_rotate %88 by %c32_i32_42 dim 1 : vector<8x128xf32>, i32 -> vector<8x128xf32>
    %93 = arith.mulf %90, %76 : vector<8x128xf32>
    %94 = arith.mulf %88, %91 : vector<8x128xf32>
    %95 = arith.addf %93, %94 : vector<8x128xf32>
    %96 = math.tanh %95 : vector<8x128xf32>
    %97 = arith.mulf %92, %96 : vector<8x128xf32>
    %c24 = arith.constant 24 : index
    %c0_43 = arith.constant 0 : index
    %98 = vector.load %arg16[%c24, %c0_43] : memref<64x128xf32, #tpu.memory_space<vmem>>, vector<8x128xf32>
    tpu.vector_store %arg16[%c24, %c0_43], %97 {strides = array<i32>} : memref<64x128xf32, #tpu.memory_space<vmem>>, vector<8x128xf32>,
    %99 = vector.extract_strided_slice %16 {offsets = [32, 0], sizes = [8, 128], strides = [1, 1]} : vector<64x128xf32> to vector<8x128xf32>
    %100 = arith.truncf %97 : vector<8x128xf32> to vector<8x128xbf16>
    %cst_44 = arith.constant dense<0.000000e+00> : vector<8x128xf32>
    %101 = tpu.matmul %100, %18, %cst_44 {dimension_numbers = #tpu.dot_dimension_numbers<[1], [0], [0], [1], [0, 0, 1, 1], [], []>} : vector<8x128xbf16>, vector<128x128xbf16>, vector<8x128xf32> -> vector<8x128xf32>
    %102 = arith.addf %99, %101 : vector<8x128xf32>
    %103 = arith.negf %102 : vector<8x128xf32>
    %104 = math.exp %103 : vector<8x128xf32>
    %cst_45 = arith.constant 1.000000e+00 : f32
    %105 = vector.broadcast %cst_45 : f32 to vector<8x128xf32>
    %106 = arith.addf %105, %104 : vector<8x128xf32>
    %107 = arith.divf %105, %106 : vector<8x128xf32>
    %108 = math.tanh %102 : vector<8x128xf32>
    %c96_i32_46 = arith.constant 96 : i32
    %109 = tpu.dynamic_rotate %107 by %c96_i32_46 dim 1 : vector<8x128xf32>, i32 -> vector<8x128xf32>
    %c64_i32_47 = arith.constant 64 : i32
    %110 = tpu.dynamic_rotate %108 by %c64_i32_47 dim 1 : vector<8x128xf32>, i32 -> vector<8x128xf32>
    %c32_i32_48 = arith.constant 32 : i32
    %111 = tpu.dynamic_rotate %107 by %c32_i32_48 dim 1 : vector<8x128xf32>, i32 -> vector<8x128xf32>
    %112 = arith.mulf %109, %95 : vector<8x128xf32>
    %113 = arith.mulf %107, %110 : vector<8x128xf32>
    %114 = arith.addf %112, %113 : vector<8x128xf32>
    %115 = math.tanh %114 : vector<8x128xf32>
    %116 = arith.mulf %111, %115 : vector<8x128xf32>
    %c32 = arith.constant 32 : index
    %c0_49 = arith.constant 0 : index
    %117 = vector.load %arg16[%c32, %c0_49] : memref<64x128xf32, #tpu.memory_space<vmem>>, vector<8x128xf32>
    tpu.vector_store %arg16[%c32, %c0_49], %116 {strides = array<i32>} : memref<64x128xf32, #tpu.memory_space<vmem>>, vector<8x128xf32>,
    %118 = vector.extract_strided_slice %16 {offsets = [40, 0], sizes = [8, 128], strides = [1, 1]} : vector<64x128xf32> to vector<8x128xf32>
    %119 = arith.truncf %116 : vector<8x128xf32> to vector<8x128xbf16>
    %cst_50 = arith.constant dense<0.000000e+00> : vector<8x128xf32>
    %120 = tpu.matmul %119, %18, %cst_50 {dimension_numbers = #tpu.dot_dimension_numbers<[1], [0], [0], [1], [0, 0, 1, 1], [], []>} : vector<8x128xbf16>, vector<128x128xbf16>, vector<8x128xf32> -> vector<8x128xf32>
    %121 = arith.addf %118, %120 : vector<8x128xf32>
    %122 = arith.negf %121 : vector<8x128xf32>
    %123 = math.exp %122 : vector<8x128xf32>
    %cst_51 = arith.constant 1.000000e+00 : f32
    %124 = vector.broadcast %cst_51 : f32 to vector<8x128xf32>
    %125 = arith.addf %124, %123 : vector<8x128xf32>
    %126 = arith.divf %124, %125 : vector<8x128xf32>
    %127 = math.tanh %121 : vector<8x128xf32>
    %c96_i32_52 = arith.constant 96 : i32
    %128 = tpu.dynamic_rotate %126 by %c96_i32_52 dim 1 : vector<8x128xf32>, i32 -> vector<8x128xf32>
    %c64_i32_53 = arith.constant 64 : i32
    %129 = tpu.dynamic_rotate %127 by %c64_i32_53 dim 1 : vector<8x128xf32>, i32 -> vector<8x128xf32>
    %c32_i32_54 = arith.constant 32 : i32
    %130 = tpu.dynamic_rotate %126 by %c32_i32_54 dim 1 : vector<8x128xf32>, i32 -> vector<8x128xf32>
    %131 = arith.mulf %128, %114 : vector<8x128xf32>
    %132 = arith.mulf %126, %129 : vector<8x128xf32>
    %133 = arith.addf %131, %132 : vector<8x128xf32>
    %134 = math.tanh %133 : vector<8x128xf32>
    %135 = arith.mulf %130, %134 : vector<8x128xf32>
    %c40 = arith.constant 40 : index
    %c0_55 = arith.constant 0 : index
    %136 = vector.load %arg16[%c40, %c0_55] : memref<64x128xf32, #tpu.memory_space<vmem>>, vector<8x128xf32>
    tpu.vector_store %arg16[%c40, %c0_55], %135 {strides = array<i32>} : memref<64x128xf32, #tpu.memory_space<vmem>>, vector<8x128xf32>,
    %137 = vector.extract_strided_slice %16 {offsets = [48, 0], sizes = [8, 128], strides = [1, 1]} : vector<64x128xf32> to vector<8x128xf32>
    %138 = arith.truncf %135 : vector<8x128xf32> to vector<8x128xbf16>
    %cst_56 = arith.constant dense<0.000000e+00> : vector<8x128xf32>
    %139 = tpu.matmul %138, %18, %cst_56 {dimension_numbers = #tpu.dot_dimension_numbers<[1], [0], [0], [1], [0, 0, 1, 1], [], []>} : vector<8x128xbf16>, vector<128x128xbf16>, vector<8x128xf32> -> vector<8x128xf32>
    %140 = arith.addf %137, %139 : vector<8x128xf32>
    %141 = arith.negf %140 : vector<8x128xf32>
    %142 = math.exp %141 : vector<8x128xf32>
    %cst_57 = arith.constant 1.000000e+00 : f32
    %143 = vector.broadcast %cst_57 : f32 to vector<8x128xf32>
    %144 = arith.addf %143, %142 : vector<8x128xf32>
    %145 = arith.divf %143, %144 : vector<8x128xf32>
    %146 = math.tanh %140 : vector<8x128xf32>
    %c96_i32_58 = arith.constant 96 : i32
    %147 = tpu.dynamic_rotate %145 by %c96_i32_58 dim 1 : vector<8x128xf32>, i32 -> vector<8x128xf32>
    %c64_i32_59 = arith.constant 64 : i32
    %148 = tpu.dynamic_rotate %146 by %c64_i32_59 dim 1 : vector<8x128xf32>, i32 -> vector<8x128xf32>
    %c32_i32_60 = arith.constant 32 : i32
    %149 = tpu.dynamic_rotate %145 by %c32_i32_60 dim 1 : vector<8x128xf32>, i32 -> vector<8x128xf32>
    %150 = arith.mulf %147, %133 : vector<8x128xf32>
    %151 = arith.mulf %145, %148 : vector<8x128xf32>
    %152 = arith.addf %150, %151 : vector<8x128xf32>
    %153 = math.tanh %152 : vector<8x128xf32>
    %154 = arith.mulf %149, %153 : vector<8x128xf32>
    %c48 = arith.constant 48 : index
    %c0_61 = arith.constant 0 : index
    %155 = vector.load %arg16[%c48, %c0_61] : memref<64x128xf32, #tpu.memory_space<vmem>>, vector<8x128xf32>
    tpu.vector_store %arg16[%c48, %c0_61], %154 {strides = array<i32>} : memref<64x128xf32, #tpu.memory_space<vmem>>, vector<8x128xf32>,
    %156 = vector.extract_strided_slice %16 {offsets = [56, 0], sizes = [8, 128], strides = [1, 1]} : vector<64x128xf32> to vector<8x128xf32>
    %157 = arith.truncf %154 : vector<8x128xf32> to vector<8x128xbf16>
    %cst_62 = arith.constant dense<0.000000e+00> : vector<8x128xf32>
    %158 = tpu.matmul %157, %18, %cst_62 {dimension_numbers = #tpu.dot_dimension_numbers<[1], [0], [0], [1], [0, 0, 1, 1], [], []>} : vector<8x128xbf16>, vector<128x128xbf16>, vector<8x128xf32> -> vector<8x128xf32>
    %159 = arith.addf %156, %158 : vector<8x128xf32>
    %160 = arith.negf %159 : vector<8x128xf32>
    %161 = math.exp %160 : vector<8x128xf32>
    %cst_63 = arith.constant 1.000000e+00 : f32
    %162 = vector.broadcast %cst_63 : f32 to vector<8x128xf32>
    %163 = arith.addf %162, %161 : vector<8x128xf32>
    %164 = arith.divf %162, %163 : vector<8x128xf32>
    %165 = math.tanh %159 : vector<8x128xf32>
    %c96_i32_64 = arith.constant 96 : i32
    %166 = tpu.dynamic_rotate %164 by %c96_i32_64 dim 1 : vector<8x128xf32>, i32 -> vector<8x128xf32>
    %c64_i32_65 = arith.constant 64 : i32
    %167 = tpu.dynamic_rotate %165 by %c64_i32_65 dim 1 : vector<8x128xf32>, i32 -> vector<8x128xf32>
    %c32_i32_66 = arith.constant 32 : i32
    %168 = tpu.dynamic_rotate %164 by %c32_i32_66 dim 1 : vector<8x128xf32>, i32 -> vector<8x128xf32>
    %169 = arith.mulf %166, %152 : vector<8x128xf32>
    %170 = arith.mulf %164, %167 : vector<8x128xf32>
    %171 = arith.addf %169, %170 : vector<8x128xf32>
    %172 = math.tanh %171 : vector<8x128xf32>
    %173 = arith.mulf %168, %172 : vector<8x128xf32>
    %c56 = arith.constant 56 : index
    %c0_67 = arith.constant 0 : index
    %174 = vector.load %arg16[%c56, %c0_67] : memref<64x128xf32, #tpu.memory_space<vmem>>, vector<8x128xf32>
    tpu.vector_store %arg16[%c56, %c0_67], %173 {strides = array<i32>} : memref<64x128xf32, #tpu.memory_space<vmem>>, vector<8x128xf32>,
    %c0_68 = arith.constant 0 : index
    %c0_69 = arith.constant 0 : index
    %175 = vector.load %arg16[%c0_68, %c0_69] : memref<64x128xf32, #tpu.memory_space<vmem>>, vector<64x128xf32>
    %176 = arith.truncf %175 : vector<64x128xf32> to vector<64x128xbf16>
    %c1 = arith.constant 1 : index
    %c0_70 = arith.constant 0 : index
    %c0_71 = arith.constant 0 : index
    %177 = vector.load %arg7[%c1, %c0_70, %c0_71] : memref<2x128x128xbf16, #tpu.memory_space<vmem>>, vector<1x128x128xbf16>
    %178 = vector.shape_cast %177 : vector<1x128x128xbf16> to vector<128x128xbf16>
    %cst_72 = arith.constant dense<0.000000e+00> : vector<64x128xf32>
    %179 = tpu.matmul %176, %178, %cst_72 {dimension_numbers = #tpu.dot_dimension_numbers<[1], [0], [0], [1], [0, 0, 1, 1], [], []>} : vector<64x128xbf16>, vector<128x128xbf16>, vector<64x128xf32> -> vector<64x128xf32>
    %c1_73 = arith.constant 1 : index
    %c0_74 = arith.constant 0 : index
    %c0_75 = arith.constant 0 : index
    %180 = vector.load %arg9[%c1_73, %c0_74, %c0_75] : memref<2x1x128xf32, #tpu.memory_space<vmem>>, vector<1x1x128xf32>
    %181 = vector.shape_cast %180 : vector<1x1x128xf32> to vector<1x128xf32>
    %182 = vector.broadcast %181 : vector<1x128xf32> to vector<64x128xf32>
    %183 = arith.addf %179, %182 : vector<64x128xf32>
    %c1_76 = arith.constant 1 : index
    %c0_77 = arith.constant 0 : index
    %c0_78 = arith.constant 0 : index
    %184 = vector.load %arg8[%c1_76, %c0_77, %c0_78] : memref<2x128x128xbf16, #tpu.memory_space<vmem>>, vector<1x128x128xbf16>
    %185 = vector.shape_cast %184 : vector<1x128x128xbf16> to vector<128x128xbf16>
    %c1_79 = arith.constant 1 : index
    %c0_80 = arith.constant 0 : index
    %c0_81 = arith.constant 0 : index
    %186 = vector.load %arg3[%c1_79, %c0_80, %c0_81] : memref<2x8x128xf32, #tpu.memory_space<vmem>>, vector<1x8x128xf32>
    %187 = vector.shape_cast %186 : vector<1x8x128xf32> to vector<8x128xf32>
    %c1_82 = arith.constant 1 : index
    %c0_83 = arith.constant 0 : index
    %c0_84 = arith.constant 0 : index
    %188 = vector.load %arg4[%c1_82, %c0_83, %c0_84] : memref<2x8x128xf32, #tpu.memory_space<vmem>>, vector<1x8x128xf32>
    %189 = vector.shape_cast %188 : vector<1x8x128xf32> to vector<8x128xf32>
    %190 = vector.extract_strided_slice %183 {offsets = [0, 0], sizes = [8, 128], strides = [1, 1]} : vector<64x128xf32> to vector<8x128xf32>
    %191 = arith.truncf %187 : vector<8x128xf32> to vector<8x128xbf16>
    %cst_85 = arith.constant dense<0.000000e+00> : vector<8x128xf32>
    %192 = tpu.matmul %191, %185, %cst_85 {dimension_numbers = #tpu.dot_dimension_numbers<[1], [0], [0], [1], [0, 0, 1, 1], [], []>} : vector<8x128xbf16>, vector<128x128xbf16>, vector<8x128xf32> -> vector<8x128xf32>
    %193 = arith.addf %190, %192 : vector<8x128xf32>
    %194 = arith.negf %193 : vector<8x128xf32>
    %195 = math.exp %194 : vector<8x128xf32>
    %cst_86 = arith.constant 1.000000e+00 : f32
    %196 = vector.broadcast %cst_86 : f32 to vector<8x128xf32>
    %197 = arith.addf %196, %195 : vector<8x128xf32>
    %198 = arith.divf %196, %197 : vector<8x128xf32>
    %199 = math.tanh %193 : vector<8x128xf32>
    %c96_i32_87 = arith.constant 96 : i32
    %200 = tpu.dynamic_rotate %198 by %c96_i32_87 dim 1 : vector<8x128xf32>, i32 -> vector<8x128xf32>
    %c64_i32_88 = arith.constant 64 : i32
    %201 = tpu.dynamic_rotate %199 by %c64_i32_88 dim 1 : vector<8x128xf32>, i32 -> vector<8x128xf32>
    %c32_i32_89 = arith.constant 32 : i32
    %202 = tpu.dynamic_rotate %198 by %c32_i32_89 dim 1 : vector<8x128xf32>, i32 -> vector<8x128xf32>
    %203 = arith.mulf %200, %189 : vector<8x128xf32>
    %204 = arith.mulf %198, %201 : vector<8x128xf32>
    %205 = arith.addf %203, %204 : vector<8x128xf32>
    %206 = math.tanh %205 : vector<8x128xf32>
    %207 = arith.mulf %202, %206 : vector<8x128xf32>
    %c0_90 = arith.constant 0 : index
    %c0_91 = arith.constant 0 : index
    %208 = vector.load %arg15[%c0_90, %c0_91] : memref<64x128xf32, #tpu.memory_space<vmem>>, vector<8x128xf32>
    tpu.vector_store %arg15[%c0_90, %c0_91], %207 {strides = array<i32>} : memref<64x128xf32, #tpu.memory_space<vmem>>, vector<8x128xf32>,
    %209 = vector.extract_strided_slice %183 {offsets = [8, 0], sizes = [8, 128], strides = [1, 1]} : vector<64x128xf32> to vector<8x128xf32>
    %210 = arith.truncf %207 : vector<8x128xf32> to vector<8x128xbf16>
    %cst_92 = arith.constant dense<0.000000e+00> : vector<8x128xf32>
    %211 = tpu.matmul %210, %185, %cst_92 {dimension_numbers = #tpu.dot_dimension_numbers<[1], [0], [0], [1], [0, 0, 1, 1], [], []>} : vector<8x128xbf16>, vector<128x128xbf16>, vector<8x128xf32> -> vector<8x128xf32>
    %212 = arith.addf %209, %211 : vector<8x128xf32>
    %213 = arith.negf %212 : vector<8x128xf32>
    %214 = math.exp %213 : vector<8x128xf32>
    %cst_93 = arith.constant 1.000000e+00 : f32
    %215 = vector.broadcast %cst_93 : f32 to vector<8x128xf32>
    %216 = arith.addf %215, %214 : vector<8x128xf32>
    %217 = arith.divf %215, %216 : vector<8x128xf32>
    %218 = math.tanh %212 : vector<8x128xf32>
    %c96_i32_94 = arith.constant 96 : i32
    %219 = tpu.dynamic_rotate %217 by %c96_i32_94 dim 1 : vector<8x128xf32>, i32 -> vector<8x128xf32>
    %c64_i32_95 = arith.constant 64 : i32
    %220 = tpu.dynamic_rotate %218 by %c64_i32_95 dim 1 : vector<8x128xf32>, i32 -> vector<8x128xf32>
    %c32_i32_96 = arith.constant 32 : i32
    %221 = tpu.dynamic_rotate %217 by %c32_i32_96 dim 1 : vector<8x128xf32>, i32 -> vector<8x128xf32>
    %222 = arith.mulf %219, %205 : vector<8x128xf32>
    %223 = arith.mulf %217, %220 : vector<8x128xf32>
    %224 = arith.addf %222, %223 : vector<8x128xf32>
    %225 = math.tanh %224 : vector<8x128xf32>
    %226 = arith.mulf %221, %225 : vector<8x128xf32>
    %c8_97 = arith.constant 8 : index
    %c0_98 = arith.constant 0 : index
    %227 = vector.load %arg15[%c8_97, %c0_98] : memref<64x128xf32, #tpu.memory_space<vmem>>, vector<8x128xf32>
    tpu.vector_store %arg15[%c8_97, %c0_98], %226 {strides = array<i32>} : memref<64x128xf32, #tpu.memory_space<vmem>>, vector<8x128xf32>,
    %228 = vector.extract_strided_slice %183 {offsets = [16, 0], sizes = [8, 128], strides = [1, 1]} : vector<64x128xf32> to vector<8x128xf32>
    %229 = arith.truncf %226 : vector<8x128xf32> to vector<8x128xbf16>
    %cst_99 = arith.constant dense<0.000000e+00> : vector<8x128xf32>
    %230 = tpu.matmul %229, %185, %cst_99 {dimension_numbers = #tpu.dot_dimension_numbers<[1], [0], [0], [1], [0, 0, 1, 1], [], []>} : vector<8x128xbf16>, vector<128x128xbf16>, vector<8x128xf32> -> vector<8x128xf32>
    %231 = arith.addf %228, %230 : vector<8x128xf32>
    %232 = arith.negf %231 : vector<8x128xf32>
    %233 = math.exp %232 : vector<8x128xf32>
    %cst_100 = arith.constant 1.000000e+00 : f32
    %234 = vector.broadcast %cst_100 : f32 to vector<8x128xf32>
    %235 = arith.addf %234, %233 : vector<8x128xf32>
    %236 = arith.divf %234, %235 : vector<8x128xf32>
    %237 = math.tanh %231 : vector<8x128xf32>
    %c96_i32_101 = arith.constant 96 : i32
    %238 = tpu.dynamic_rotate %236 by %c96_i32_101 dim 1 : vector<8x128xf32>, i32 -> vector<8x128xf32>
    %c64_i32_102 = arith.constant 64 : i32
    %239 = tpu.dynamic_rotate %237 by %c64_i32_102 dim 1 : vector<8x128xf32>, i32 -> vector<8x128xf32>
    %c32_i32_103 = arith.constant 32 : i32
    %240 = tpu.dynamic_rotate %236 by %c32_i32_103 dim 1 : vector<8x128xf32>, i32 -> vector<8x128xf32>
    %241 = arith.mulf %238, %224 : vector<8x128xf32>
    %242 = arith.mulf %236, %239 : vector<8x128xf32>
    %243 = arith.addf %241, %242 : vector<8x128xf32>
    %244 = math.tanh %243 : vector<8x128xf32>
    %245 = arith.mulf %240, %244 : vector<8x128xf32>
    %c16_104 = arith.constant 16 : index
    %c0_105 = arith.constant 0 : index
    %246 = vector.load %arg15[%c16_104, %c0_105] : memref<64x128xf32, #tpu.memory_space<vmem>>, vector<8x128xf32>
    tpu.vector_store %arg15[%c16_104, %c0_105], %245 {strides = array<i32>} : memref<64x128xf32, #tpu.memory_space<vmem>>, vector<8x128xf32>,
    %247 = vector.extract_strided_slice %183 {offsets = [24, 0], sizes = [8, 128], strides = [1, 1]} : vector<64x128xf32> to vector<8x128xf32>
    %248 = arith.truncf %245 : vector<8x128xf32> to vector<8x128xbf16>
    %cst_106 = arith.constant dense<0.000000e+00> : vector<8x128xf32>
    %249 = tpu.matmul %248, %185, %cst_106 {dimension_numbers = #tpu.dot_dimension_numbers<[1], [0], [0], [1], [0, 0, 1, 1], [], []>} : vector<8x128xbf16>, vector<128x128xbf16>, vector<8x128xf32> -> vector<8x128xf32>
    %250 = arith.addf %247, %249 : vector<8x128xf32>
    %251 = arith.negf %250 : vector<8x128xf32>
    %252 = math.exp %251 : vector<8x128xf32>
    %cst_107 = arith.constant 1.000000e+00 : f32
    %253 = vector.broadcast %cst_107 : f32 to vector<8x128xf32>
    %254 = arith.addf %253, %252 : vector<8x128xf32>
    %255 = arith.divf %253, %254 : vector<8x128xf32>
    %256 = math.tanh %250 : vector<8x128xf32>
    %c96_i32_108 = arith.constant 96 : i32
    %257 = tpu.dynamic_rotate %255 by %c96_i32_108 dim 1 : vector<8x128xf32>, i32 -> vector<8x128xf32>
    %c64_i32_109 = arith.constant 64 : i32
    %258 = tpu.dynamic_rotate %256 by %c64_i32_109 dim 1 : vector<8x128xf32>, i32 -> vector<8x128xf32>
    %c32_i32_110 = arith.constant 32 : i32
    %259 = tpu.dynamic_rotate %255 by %c32_i32_110 dim 1 : vector<8x128xf32>, i32 -> vector<8x128xf32>
    %260 = arith.mulf %257, %243 : vector<8x128xf32>
    %261 = arith.mulf %255, %258 : vector<8x128xf32>
    %262 = arith.addf %260, %261 : vector<8x128xf32>
    %263 = math.tanh %262 : vector<8x128xf32>
    %264 = arith.mulf %259, %263 : vector<8x128xf32>
    %c24_111 = arith.constant 24 : index
    %c0_112 = arith.constant 0 : index
    %265 = vector.load %arg15[%c24_111, %c0_112] : memref<64x128xf32, #tpu.memory_space<vmem>>, vector<8x128xf32>
    tpu.vector_store %arg15[%c24_111, %c0_112], %264 {strides = array<i32>} : memref<64x128xf32, #tpu.memory_space<vmem>>, vector<8x128xf32>,
    %266 = vector.extract_strided_slice %183 {offsets = [32, 0], sizes = [8, 128], strides = [1, 1]} : vector<64x128xf32> to vector<8x128xf32>
    %267 = arith.truncf %264 : vector<8x128xf32> to vector<8x128xbf16>
    %cst_113 = arith.constant dense<0.000000e+00> : vector<8x128xf32>
    %268 = tpu.matmul %267, %185, %cst_113 {dimension_numbers = #tpu.dot_dimension_numbers<[1], [0], [0], [1], [0, 0, 1, 1], [], []>} : vector<8x128xbf16>, vector<128x128xbf16>, vector<8x128xf32> -> vector<8x128xf32>
    %269 = arith.addf %266, %268 : vector<8x128xf32>
    %270 = arith.negf %269 : vector<8x128xf32>
    %271 = math.exp %270 : vector<8x128xf32>
    %cst_114 = arith.constant 1.000000e+00 : f32
    %272 = vector.broadcast %cst_114 : f32 to vector<8x128xf32>
    %273 = arith.addf %272, %271 : vector<8x128xf32>
    %274 = arith.divf %272, %273 : vector<8x128xf32>
    %275 = math.tanh %269 : vector<8x128xf32>
    %c96_i32_115 = arith.constant 96 : i32
    %276 = tpu.dynamic_rotate %274 by %c96_i32_115 dim 1 : vector<8x128xf32>, i32 -> vector<8x128xf32>
    %c64_i32_116 = arith.constant 64 : i32
    %277 = tpu.dynamic_rotate %275 by %c64_i32_116 dim 1 : vector<8x128xf32>, i32 -> vector<8x128xf32>
    %c32_i32_117 = arith.constant 32 : i32
    %278 = tpu.dynamic_rotate %274 by %c32_i32_117 dim 1 : vector<8x128xf32>, i32 -> vector<8x128xf32>
    %279 = arith.mulf %276, %262 : vector<8x128xf32>
    %280 = arith.mulf %274, %277 : vector<8x128xf32>
    %281 = arith.addf %279, %280 : vector<8x128xf32>
    %282 = math.tanh %281 : vector<8x128xf32>
    %283 = arith.mulf %278, %282 : vector<8x128xf32>
    %c32_118 = arith.constant 32 : index
    %c0_119 = arith.constant 0 : index
    %284 = vector.load %arg15[%c32_118, %c0_119] : memref<64x128xf32, #tpu.memory_space<vmem>>, vector<8x128xf32>
    tpu.vector_store %arg15[%c32_118, %c0_119], %283 {strides = array<i32>} : memref<64x128xf32, #tpu.memory_space<vmem>>, vector<8x128xf32>,
    %285 = vector.extract_strided_slice %183 {offsets = [40, 0], sizes = [8, 128], strides = [1, 1]} : vector<64x128xf32> to vector<8x128xf32>
    %286 = arith.truncf %283 : vector<8x128xf32> to vector<8x128xbf16>
    %cst_120 = arith.constant dense<0.000000e+00> : vector<8x128xf32>
    %287 = tpu.matmul %286, %185, %cst_120 {dimension_numbers = #tpu.dot_dimension_numbers<[1], [0], [0], [1], [0, 0, 1, 1], [], []>} : vector<8x128xbf16>, vector<128x128xbf16>, vector<8x128xf32> -> vector<8x128xf32>
    %288 = arith.addf %285, %287 : vector<8x128xf32>
    %289 = arith.negf %288 : vector<8x128xf32>
    %290 = math.exp %289 : vector<8x128xf32>
    %cst_121 = arith.constant 1.000000e+00 : f32
    %291 = vector.broadcast %cst_121 : f32 to vector<8x128xf32>
    %292 = arith.addf %291, %290 : vector<8x128xf32>
    %293 = arith.divf %291, %292 : vector<8x128xf32>
    %294 = math.tanh %288 : vector<8x128xf32>
    %c96_i32_122 = arith.constant 96 : i32
    %295 = tpu.dynamic_rotate %293 by %c96_i32_122 dim 1 : vector<8x128xf32>, i32 -> vector<8x128xf32>
    %c64_i32_123 = arith.constant 64 : i32
    %296 = tpu.dynamic_rotate %294 by %c64_i32_123 dim 1 : vector<8x128xf32>, i32 -> vector<8x128xf32>
    %c32_i32_124 = arith.constant 32 : i32
    %297 = tpu.dynamic_rotate %293 by %c32_i32_124 dim 1 : vector<8x128xf32>, i32 -> vector<8x128xf32>
    %298 = arith.mulf %295, %281 : vector<8x128xf32>
    %299 = arith.mulf %293, %296 : vector<8x128xf32>
    %300 = arith.addf %298, %299 : vector<8x128xf32>
    %301 = math.tanh %300 : vector<8x128xf32>
    %302 = arith.mulf %297, %301 : vector<8x128xf32>
    %c40_125 = arith.constant 40 : index
    %c0_126 = arith.constant 0 : index
    %303 = vector.load %arg15[%c40_125, %c0_126] : memref<64x128xf32, #tpu.memory_space<vmem>>, vector<8x128xf32>
    tpu.vector_store %arg15[%c40_125, %c0_126], %302 {strides = array<i32>} : memref<64x128xf32, #tpu.memory_space<vmem>>, vector<8x128xf32>,
    %304 = vector.extract_strided_slice %183 {offsets = [48, 0], sizes = [8, 128], strides = [1, 1]} : vector<64x128xf32> to vector<8x128xf32>
    %305 = arith.truncf %302 : vector<8x128xf32> to vector<8x128xbf16>
    %cst_127 = arith.constant dense<0.000000e+00> : vector<8x128xf32>
    %306 = tpu.matmul %305, %185, %cst_127 {dimension_numbers = #tpu.dot_dimension_numbers<[1], [0], [0], [1], [0, 0, 1, 1], [], []>} : vector<8x128xbf16>, vector<128x128xbf16>, vector<8x128xf32> -> vector<8x128xf32>
    %307 = arith.addf %304, %306 : vector<8x128xf32>
    %308 = arith.negf %307 : vector<8x128xf32>
    %309 = math.exp %308 : vector<8x128xf32>
    %cst_128 = arith.constant 1.000000e+00 : f32
    %310 = vector.broadcast %cst_128 : f32 to vector<8x128xf32>
    %311 = arith.addf %310, %309 : vector<8x128xf32>
    %312 = arith.divf %310, %311 : vector<8x128xf32>
    %313 = math.tanh %307 : vector<8x128xf32>
    %c96_i32_129 = arith.constant 96 : i32
    %314 = tpu.dynamic_rotate %312 by %c96_i32_129 dim 1 : vector<8x128xf32>, i32 -> vector<8x128xf32>
    %c64_i32_130 = arith.constant 64 : i32
    %315 = tpu.dynamic_rotate %313 by %c64_i32_130 dim 1 : vector<8x128xf32>, i32 -> vector<8x128xf32>
    %c32_i32_131 = arith.constant 32 : i32
    %316 = tpu.dynamic_rotate %312 by %c32_i32_131 dim 1 : vector<8x128xf32>, i32 -> vector<8x128xf32>
    %317 = arith.mulf %314, %300 : vector<8x128xf32>
    %318 = arith.mulf %312, %315 : vector<8x128xf32>
    %319 = arith.addf %317, %318 : vector<8x128xf32>
    %320 = math.tanh %319 : vector<8x128xf32>
    %321 = arith.mulf %316, %320 : vector<8x128xf32>
    %c48_132 = arith.constant 48 : index
    %c0_133 = arith.constant 0 : index
    %322 = vector.load %arg15[%c48_132, %c0_133] : memref<64x128xf32, #tpu.memory_space<vmem>>, vector<8x128xf32>
    tpu.vector_store %arg15[%c48_132, %c0_133], %321 {strides = array<i32>} : memref<64x128xf32, #tpu.memory_space<vmem>>, vector<8x128xf32>,
    %323 = vector.extract_strided_slice %183 {offsets = [56, 0], sizes = [8, 128], strides = [1, 1]} : vector<64x128xf32> to vector<8x128xf32>
    %324 = arith.truncf %321 : vector<8x128xf32> to vector<8x128xbf16>
    %cst_134 = arith.constant dense<0.000000e+00> : vector<8x128xf32>
    %325 = tpu.matmul %324, %185, %cst_134 {dimension_numbers = #tpu.dot_dimension_numbers<[1], [0], [0], [1], [0, 0, 1, 1], [], []>} : vector<8x128xbf16>, vector<128x128xbf16>, vector<8x128xf32> -> vector<8x128xf32>
    %326 = arith.addf %323, %325 : vector<8x128xf32>
    %327 = arith.negf %326 : vector<8x128xf32>
    %328 = math.exp %327 : vector<8x128xf32>
    %cst_135 = arith.constant 1.000000e+00 : f32
    %329 = vector.broadcast %cst_135 : f32 to vector<8x128xf32>
    %330 = arith.addf %329, %328 : vector<8x128xf32>
    %331 = arith.divf %329, %330 : vector<8x128xf32>
    %332 = math.tanh %326 : vector<8x128xf32>
    %c96_i32_136 = arith.constant 96 : i32
    %333 = tpu.dynamic_rotate %331 by %c96_i32_136 dim 1 : vector<8x128xf32>, i32 -> vector<8x128xf32>
    %c64_i32_137 = arith.constant 64 : i32
    %334 = tpu.dynamic_rotate %332 by %c64_i32_137 dim 1 : vector<8x128xf32>, i32 -> vector<8x128xf32>
    %c32_i32_138 = arith.constant 32 : i32
    %335 = tpu.dynamic_rotate %331 by %c32_i32_138 dim 1 : vector<8x128xf32>, i32 -> vector<8x128xf32>
    %336 = arith.mulf %333, %319 : vector<8x128xf32>
    %337 = arith.mulf %331, %334 : vector<8x128xf32>
    %338 = arith.addf %336, %337 : vector<8x128xf32>
    %339 = math.tanh %338 : vector<8x128xf32>
    %340 = arith.mulf %335, %339 : vector<8x128xf32>
    %c56_139 = arith.constant 56 : index
    %c0_140 = arith.constant 0 : index
    %341 = vector.load %arg15[%c56_139, %c0_140] : memref<64x128xf32, #tpu.memory_space<vmem>>, vector<8x128xf32>
    tpu.vector_store %arg15[%c56_139, %c0_140], %340 {strides = array<i32>} : memref<64x128xf32, #tpu.memory_space<vmem>>, vector<8x128xf32>,
    %c0_141 = arith.constant 0 : index
    %c0_142 = arith.constant 0 : index
    %342 = vector.load %arg15[%c0_141, %c0_142] : memref<64x128xf32, #tpu.memory_space<vmem>>, vector<64x128xf32>
    %343 = arith.truncf %342 : vector<64x128xf32> to vector<64x128xbf16>
    %c0_143 = arith.constant 0 : index
    %c0_144 = arith.constant 0 : index
    %344 = vector.load %arg10[%c0_143, %c0_144] : memref<128x9xbf16, #tpu.memory_space<vmem>>, vector<128x9xbf16>
    %cst_145 = arith.constant dense<0.000000e+00> : vector<64x9xf32>
    %345 = tpu.matmul %343, %344, %cst_145 {dimension_numbers = #tpu.dot_dimension_numbers<[1], [0], [0], [1], [0, 0, 1, 1], [], []>} : vector<64x128xbf16>, vector<128x9xbf16>, vector<64x9xf32> -> vector<64x9xf32>
    %c0_146 = arith.constant 0 : index
    %c0_147 = arith.constant 0 : index
    %346 = vector.load %arg11[%c0_146, %c0_147] : memref<1x9xf32, #tpu.memory_space<vmem>>, vector<1x9xf32>
    %347 = vector.broadcast %346 : vector<1x9xf32> to vector<64x9xf32>
    %348 = arith.addf %345, %347 : vector<64x9xf32>
    %349 = vector.extract_strided_slice %348 {offsets = [0, 0], sizes = [64, 8], strides = [1, 1]} : vector<64x9xf32> to vector<64x8xf32>
    %350 = vector.shape_cast %349 : vector<64x8xf32> to vector<8x8x8xf32>
    %351 = vector.extract_strided_slice %348 {offsets = [0, 8], sizes = [64, 1], strides = [1, 1]} : vector<64x9xf32> to vector<64x1xf32>
    %352 = vector.shape_cast %351 : vector<64x1xf32> to vector<8x8x1xf32>
    %c0_148 = arith.constant 0 : index
    %c0_149 = arith.constant 0 : index
    %c0_150 = arith.constant 0 : index
    %353 = vector.load %arg1[%c0_148, %c0_149, %c0_150] : memref<8x8x8xf32, #tpu.memory_space<vmem>>, vector<8x8x8xf32>
    %354 = arith.mulf %350, %353 : vector<8x8x8xf32>
    %355 = vector.broadcast %352 : vector<8x8x1xf32> to vector<8x8x8xf32>
    %356 = arith.addf %355, %354 : vector<8x8x8xf32>
    %c0_151 = arith.constant 0 : index
    %c0_152 = arith.constant 0 : index
    %c0_153 = arith.constant 0 : index
    %357 = vector.load %arg14[%c0_151, %c0_152, %c0_153] : memref<8x8x8xf32, #tpu.memory_space<vmem>>, vector<8x8x8xf32>
    tpu.vector_store %arg14[%c0_151, %c0_152, %c0_153], %356 {strides = array<i32>} : memref<8x8x8xf32, #tpu.memory_space<vmem>>, vector<8x8x8xf32>,
    %c0_154 = arith.constant 0 : index
    %c0_155 = arith.constant 0 : index
    %358 = vector.load %arg2[%c0_154, %c0_155] : memref<8x8xi32, #tpu.memory_space<vmem>>, vector<8x8xi32>
    %359 = tpu.iota {dimensions = array<i32: 2>} : vector<8x8x8xi32>
    %360 = vector.shape_cast %358 : vector<8x8xi32> to vector<8x8x1xi32>
    %361 = vector.broadcast %360 : vector<8x8x1xi32> to vector<8x8x8xi32>
    %362 = arith.cmpi eq, %359, %361 : vector<8x8x8xi32>
    %363 = arith.extui %362 : vector<8x8x8xi1> to vector<8x8x8xi32>
    %364 = arith.sitofp %363 : vector<8x8x8xi32> to vector<8x8x8xf32>
    %365 = arith.mulf %356, %364 : vector<8x8x8xf32>
    %cst_156 = arith.constant dense<0.000000e+00> : vector<8x8xf32>
    %366 = vector.multi_reduction <add>, %365, %cst_156 [2] : vector<8x8x8xf32> to vector<8x8xf32>
    %c0_157 = arith.constant 0 : index
    %c0_158 = arith.constant 0 : index
    %367 = vector.load %arg12[%c0_157, %c0_158] : memref<8x8xf32, #tpu.memory_space<vmem>>, vector<8x8xf32>
    tpu.vector_store %arg12[%c0_157, %c0_158], %366 {strides = array<i32>} : memref<8x8xf32, #tpu.memory_space<vmem>>, vector<8x8xf32>,
    %368 = tpu.iota {dimensions = array<i32: 1>} : vector<8x8x8xi32>
    %c2_i32 = arith.constant 2 : i32
    %369 = vector.broadcast %c2_i32 : i32 to vector<8x8x8xi32>
    %370 = arith.cmpi slt, %368, %369 : vector<8x8x8xi32>
    %cst_159 = arith.constant 0x7F800000 : f32
    %371 = vector.broadcast %cst_159 : f32 to vector<8x8x8xf32>
    %372 = arith.select %370, %356, %371 : vector<8x8x8xi1>, vector<8x8x8xf32>
    %373 = vector.shape_cast %372 : vector<8x8x8xf32> to vector<1x8x8x8xf32>
    %cst_160 = arith.constant dense<0x7F800000> : vector<1xf32>
    %374 = vector.multi_reduction <minimumf>, %373, %cst_160 [1, 2, 3] : vector<1x8x8x8xf32> to vector<1xf32>
    %375 = vector.shape_cast %374 : vector<1xf32> to vector<1x1x1x1xf32>
    %376 = vector.extract %375[0, 0, 0, 0] : f32 from vector<1x1x1x1xf32>
    %cst_161 = arith.constant 1.000000e+00 : f32
    %377 = vector.broadcast %cst_161 : f32 to vector<8x8x8xf32>
    %378 = arith.addf %377, %356 : vector<8x8x8xf32>
    %379 = vector.broadcast %376 : f32 to vector<8x8x8xf32>
    %380 = arith.subf %378, %379 : vector<8x8x8xf32>
    %381 = arith.mulf %380, %353 : vector<8x8x8xf32>
    %cst_162 = arith.constant dense<0xFF800000> : vector<8x8xf32>
    %382 = vector.multi_reduction <maximumf>, %381, %cst_162 [2] : vector<8x8x8xf32> to vector<8x8xf32>
    %383 = vector.shape_cast %382 : vector<8x8xf32> to vector<8x8x1xf32>
    %384 = vector.broadcast %383 : vector<8x8x1xf32> to vector<8x8x8xf32>
    %385 = arith.cmpf oeq, %381, %384 : vector<8x8x8xf32>
    %c8_i32 = arith.constant 8 : i32
    %386 = vector.broadcast %c8_i32 : i32 to vector<8x8x8xi32>
    %387 = arith.select %385, %359, %386 : vector<8x8x8xi1>, vector<8x8x8xi32>
    %cst_163 = arith.constant dense<2147483647> : vector<8x8xi32>
    %388 = vector.multi_reduction <minsi>, %387, %cst_163 [2] : vector<8x8x8xi32> to vector<8x8xi32>
    %c0_164 = arith.constant 0 : index
    %c0_165 = arith.constant 0 : index
    %389 = vector.load %arg13[%c0_164, %c0_165] : memref<8x8xi32, #tpu.memory_space<vmem>>, vector<8x8xi32>
    tpu.vector_store %arg13[%c0_164, %c0_165], %388 {strides = array<i32>} : memref<8x8xi32, #tpu.memory_space<vmem>>, vector<8x8xi32>,
    return
  }
}

</mosaic_0001>

<bundles_post_ra>
// kernel: lstm_net_forward.1
= control target key start
LH: loop header
LB: loop body
LE: loop exit
PB: predicated region body
PF: predicated region fallthrough
CT: control target
= control target key end

     0   :  { %vm73_vm0 = vcmask 130048   ;;  %v3102_v22 = vmov 0.0   ;;  %vm3103_vm1 = vmmov 0   ;;  %s3104_s23 = smov 32   ;;  %s3105_s24 = smov 96   ;;  %vm1772_vm2 = vcmask 64512   ;;  %s4279_s5 = inlined_call_operand.vmem [shape: bf16[16,128], index: 5, kind: input, shape index: {}]   ;;  %s4280_s0 = inlined_call_operand.vmem [shape: f32[64,16], index: 0, kind: input, shape index: {}]   ;;  %s4281_s7 = inlined_call_operand.vmem [shape: bf16[2,128,128], index: 7, kind: input, shape index: {}]   ;;  %s4282_s8 = inlined_call_operand.vmem [shape: bf16[2,128,128], index: 8, kind: input, shape index: {}]   ;;  %s4283_s6 = inlined_call_operand.vmem [shape: f32[1,128], index: 6, kind: input, shape index: {}]   ;;  %s4284_s3 = inlined_call_operand.vmem [shape: f32[2,8,128], index: 3, kind: input, shape index: {}]   ;;  %s4285_s9 = inlined_call_operand.vmem [shape: f32[2,1,128], index: 9, kind: input, shape index: {}]   ;;  %s4286_s4 = inlined_call_operand.vmem [shape: f32[2,8,128], index: 4, kind: input, shape index: {}]   ;;  %s4287_s15 = inlined_call_operand.vmem [shape: f32[64,128], index: 15, kind: output, shape index: {3}]   ;;  %s4288_s10 = inlined_call_operand.vmem [shape: bf16[128,9], index: 10, kind: input, shape index: {}]   ;;  %s4289_s11 = inlined_call_operand.vmem [shape: f32[1,9], index: 11, kind: input, shape index: {}]   ;;  %s4290_s1 = inlined_call_operand.vmem [shape: f32[8,8,8], index: 1, kind: input, shape index: {}]   ;;  %s4291_s14 = inlined_call_operand.vmem [shape: f32[8,8,8], index: 14, kind: output, shape index: {2}]   ;;  %s4292_s2 = inlined_call_operand.vmem [shape: s32[8,8], index: 2, kind: input, shape index: {}]   ;;  %s4293_s12 = inlined_call_operand.vmem [shape: f32[8,8], index: 12, kind: output, shape index: {0}]   ;;  %s4294_s13 = inlined_call_operand.vmem [shape: s32[8,8], index: 13, kind: output, shape index: {1}]  }
   0x1   :  { %v2933_v0 = vld [vmem:[%s4279_s5] sm:$0xff]   ;;  %v47_v2 = vld [vmem:[%s4280_s0 + $0x8] sm:$0xff]  ;;  %v48_v3 = vld [vmem:[%s4280_s0 + $0x10] sm:$0xff]  ;;  %s3106_s25 = smov 64  }
   0x2   :  { %v46_v1 = vld [vmem:[%s4280_s0] sm:$0xff]  ;;  %2521 = vmatprep.subr.bf16.mxu1 %v2933_v0  ;;  %v49_v5 = vld [vmem:[%s4280_s0 + $0x18] sm:$0xff]  ;;  %v51_v7 = vld [vmem:[%s4280_s0 + $0x28] sm:$0xff] }
   0x3   :  { %v54_v4 = vpack.c.bf16 %v47_v2, %v46_v1  ;;  %v50_v6 = vld [vmem:[%s4280_s0 + $0x20] sm:$0xff]  ;;  %2522 = vmatpush3.bf16.msra.mxu1 %v2933_v0  ;;  %v55_v8 = vpack.c.bf16 %v49_v5, %v48_v3  ;;  %v2934_v10 = vld [vmem:[%s4281_s7 + $0x38] sm:$0xff]   ;;  %v2935_v11 = vld [vmem:[%s4281_s7 + $0x30] sm:$0xff]  }
   0x4   :  { %v56_v9 = vpack.c.bf16 %v51_v7, %v50_v6  ;;  %v52_v12 = vld [vmem:[%s4280_s0 + $0x30] sm:$0xff]  ;;  %2531 = vmatprep.subr.bf16.mxu0 %v2934_v10  ;;  %v53_v13 = vld [vmem:[%s4280_s0 + $0x38] sm:$0xff]  ;;  %v2936_v14 = vld [vmem:[%s4281_s7 + $0x28] sm:$0xff]   ;;  %2575 = vmatprep.subr.bf16.mxu1 %v3102_v22 }
   0x5   :  { %2523 = vmatprep.mubr.msk.bf16.mxu1 %vm73_vm0, %v54_v4  ;;  %2532 = vmatpush3.bf16.msra.mxu0 %v2934_v10  ;;  %v57_v15 = vpack.c.bf16 %v53_v13, %v52_v12  ;;  %v2937_v16 = vld [vmem:[%s4281_s7 + $0x20] sm:$0xff]   ;;  %v2938_v17 = vld [vmem:[%s4281_s7 + $0x18] sm:$0xff]   ;;  %v2939_v18 = vld [vmem:[%s4281_s7 + $0x10] sm:$0xff]  }
   0x6   :  { %2524 = vmatmul.mubr.msk.bf16.vlgmr.msra.gmra.mxu1 %vm73_vm0, %v55_v8  ;;  %2533 = vmatprep.subr.bf16.mxu0 %v2935_v11  ;;  %v2940_v19 = vld [vmem:[%s4281_s7 + $0x8] sm:$0xff]   ;;  %v2941_v20 = vld [vmem:[%s4281_s7] sm:$0xff]   ;;  %v3246_v21 = vld [vmem:[%s4282_s8 + $0x38] sm:$0xff]  }
   0x7   :  { %2527 = vmatprep.mubr.msk.bf16.mxu1 %vm73_vm0, %v56_v9  ;;  %2576 = vmatpush3.bf16.msra.mxu1 %v3246_v21  ;;  %v3255_v23 = vld [vmem:[%s4282_s8 + $0x30] sm:$0xff]   ;;  %v3261_v24 = vld [vmem:[%s4282_s8 + $0x28] sm:$0xff]   ;;  %v3269_v25 = vld [vmem:[%s4282_s8 + $0x20] sm:$0xff]  }
   0x8   :  { %2577 = vmatprep.subr.bf16.mxu1 %v3102_v22  ;;  %v3276_v26 = vld [vmem:[%s4282_s8 + $0x18] sm:$0xff]   ;;  %v3283_v27 = vld [vmem:[%s4282_s8 + $0x10] sm:$0xff]   ;;  %v3290_v28 = vld [vmem:[%s4282_s8 + $0x8] sm:$0xff]  }
   0x9   :  { %2534 = vmatpush3.bf16.msra.mxu0 %v2935_v11  ;;  %v3297_v29 = vld [vmem:[%s4282_s8] sm:$0xff]  }
   0xa   :  { %2535 = vmatprep.subr.bf16.mxu0 %v2936_v14  ;;  %v2228_v32 = vld [vmem:[%s4283_s6] ss:$0 sm:$0xff] }
   0xb   :  { %2578 = vmatpush3.bf16.msra.mxu1 %v3255_v23  ;;  %v315_v59 = vld [vmem:[%s4284_s3] sm:$0xff] }
   0xc   :  { %2579 = vmatprep.subr.bf16.mxu1 %v3102_v22  ;;  %v317_v60 = vpack.c.bf16 %v315_v59, %v315_v59  ;;  %v2234_v61 = vld [vmem:[%s4285_s9] ss:$0 sm:$0xff] }
   0xd   :  { %2536 = vmatpush3.bf16.msra.mxu0 %v2936_v14 }
   0xe   :  { %2528 = vmatmul.mubr.msk.bf16.gmra.mxu1 %vm73_vm0, %v57_v15  ;;  %2537 = vmatprep.subr.bf16.mxu0 %v2937_v16 }
   0xf   :  { %2580 = vmatpush3.bf16.msra.mxu1 %v3261_v24  ;;  %2591 = vmatprep.mubr.msk.bf16.mxu1 %vm3103_vm1, %v3102_v22 }
  0x10   :  { %2581 = vmatprep.subr.bf16.mxu1 %v3102_v22 }
  0x11   :  { %2538 = vmatpush3.bf16.msra.mxu0 %v2937_v16 }
  0x12   :  { %2539 = vmatprep.subr.bf16.mxu0 %v2938_v17 }
  0x13   :  { %2582 = vmatpush3.bf16.msra.mxu1 %v3269_v25 }
  0x14   :  { %2583 = vmatprep.subr.bf16.mxu1 %v3102_v22 }
  0x15   :  { %2540 = vmatpush3.bf16.msra.mxu0 %v2938_v17 }
  0x16   :  { %2541 = vmatprep.subr.bf16.mxu0 %v2939_v18 }
  0x17   :  { %2584 = vmatpush3.bf16.msra.mxu1 %v3276_v26 }
  0x18   :  { %2585 = vmatprep.subr.bf16.mxu1 %v3102_v22 }
  0x19   :  { %2542 = vmatpush3.bf16.msra.mxu0 %v2939_v18 }
  0x1a   :  { %2543 = vmatprep.subr.bf16.mxu0 %v2940_v19 }
  0x1b   :  { %2586 = vmatpush3.bf16.msra.mxu1 %v3283_v27 }
  0x1c   :  { %2587 = vmatprep.subr.bf16.mxu1 %v3102_v22 }
  0x1d   :  { %2544 = vmatpush3.bf16.msra.mxu0 %v2940_v19 }
  0x1e   :  { %2545 = vmatprep.subr.bf16.mxu0 %v2941_v20 }
  0x1f   :  { %2588 = vmatpush3.bf16.msra.mxu1 %v3290_v28 }
  0x20   :  { %2589 = vmatprep.subr.bf16.mxu1 %v3102_v22 }
  0x21   :  { %2546 = vmatpush3.bf16.msra.mxu0 %v2941_v20 }
  0x22   :  { %2555 = vmatprep.subr.bf16.mxu0 %v3102_v22 }
  0x23   :  { %2590 = vmatpush3.bf16.msra.mxu1 %v3297_v29 }
  0x24   :  { %2615 = vmatprep.subr.bf16.mxu1 %v3102_v22 }
  0xc6   :  { %v2525_v30 = vpop.f32.mrf.mxu1 }
  0xc7   :  { %v129_v36 = vadd.f32 %v2525_v30, %v2228_v32 }
  0xc8   :  { %v120_v31 = vpop.f32.mrf.mxu1 }
  0xc9   :  { %v121_v34 = vadd.f32 %v2228_v32, %v120_v31  ;;  %v153_v43 = vmax.f32 %v129_v36, 0.0 }
  0xca   :  { %v2526_v33 = vpop.f32.mrf.mxu1 }
  0xcb   :  { %v132_v35 = vadd.f32 %v2526_v33, %v2228_v32  ;;  %v151_v41 = vmax.f32 %v121_v34, 0.0  ;;  %v316_v34 = vld [vmem:[%s4286_s4] sm:$0xff] }
  0xcc   :  { %v123_v37 = vpop.f32.mrf.mxu1 }
  0xcd   :  { %v124_v38 = vadd.f32 %v2228_v32, %v123_v37  ;;  %v154_v39 = vmax.f32 %v132_v35, 0.0 }
  0xce   :  { %v2529_v40 = vpop.f32.mrf.mxu1 }
  0xcf   :  { %v152_v42 = vmax.f32 %v124_v38, 0.0  ;;  %v145_v44 = vadd.f32 %v2529_v40, %v2228_v32  ;;  %v160_v48 = vpack.c.bf16 %v154_v39, %v153_v43 }
  0xd0   :  { %v136_v45 = vpop.f32.mrf.mxu1 }
  0xd1   :  { %v137_v46 = vadd.f32 %v2228_v32, %v136_v45  ;;  %v159_v47 = vpack.c.bf16 %v152_v42, %v151_v41  ;;  %v157_v51 = vmax.f32 %v145_v44, 0.0 }
  0xd2   :  { %v2530_v49 = vpop.f32.mrf.mxu1 }
  0xd3   :  { %2547 = vmatprep.mubr.bf16.mxu0 %v159_v47  ;;  %v148_v50 = vadd.f32 %v2530_v49, %v2228_v32  ;;  %v155_v53 = vmax.f32 %v137_v46, 0.0 }
  0xd4   :  { %2548 = vmatmul.mubr.bf16.vlgmr.msra.gmra.mxu0 %v160_v48  ;;  %v139_v52 = vpop.f32.mrf.mxu1 }
  0xd5   :  { %v158_v54 = vmax.f32 %v148_v50, 0.0  ;;  %2556 = vmatpush3.bf16.msra.mxu0 %v3246_v21  ;;  %v140_v55 = vadd.f32 %v2228_v32, %v139_v52 }
  0xd6   :  { %2557 = vmatprep.subr.bf16.mxu0 %v3102_v22 }
  0xd7   :  { %v156_v56 = vmax.f32 %v140_v55, 0.0  ;;  %v162_v57 = vpack.c.bf16 %v158_v54, %v157_v51 }
  0xd9   :  { %v161_v58 = vpack.c.bf16 %v156_v56, %v155_v53  ;;  %2558 = vmatpush3.bf16.msra.mxu0 %v3255_v23 }
  0xda   :  { %2559 = vmatprep.subr.bf16.mxu0 %v3102_v22 }
  0xdb   :  { %2551 = vmatprep.mubr.bf16.mxu0 %v161_v58 }
  0xdc   :  { %2552 = vmatmul.mubr.bf16.gmra.mxu0 %v162_v57 }
  0xdd   :  { %2560 = vmatpush3.bf16.msra.mxu0 %v3261_v24  ;;  %2571 = vmatprep.mubr.msk.bf16.mxu0 %vm3103_vm1, %v3102_v22 }
  0xde   :  { %2561 = vmatprep.subr.bf16.mxu0 %v3102_v22 }
  0xe1   :  { %2562 = vmatpush3.bf16.msra.mxu0 %v3269_v25 }
  0xe2   :  { %2563 = vmatprep.subr.bf16.mxu0 %v3102_v22 }
  0xe5   :  { %2564 = vmatpush3.bf16.msra.mxu0 %v3276_v26 }
  0xe6   :  { %2565 = vmatprep.subr.bf16.mxu0 %v3102_v22 }
  0xe9   :  { %2566 = vmatpush3.bf16.msra.mxu0 %v3283_v27 }
  0xea   :  { %2567 = vmatprep.subr.bf16.mxu0 %v3102_v22 }
  0xed   :  { %2568 = vmatpush3.bf16.msra.mxu0 %v3290_v28 }
  0xee   :  { %2569 = vmatprep.subr.bf16.mxu0 %v3102_v22 }
  0xf1   :  { %2570 = vmatpush3.bf16.msra.mxu0 %v3297_v29 }
  0xf2   :  { %2595 = vmatprep.subr.bf16.mxu0 %v3102_v22 }
  0xf4   :  { %2572 = vmatmul.mubr.bf16.vlgmr.msra.gmra.mxu0 %v317_v60 }
  0xf5   :  { %2596 = vmatpush3.bf16.msra.mxu0 %v3246_v21  ;;  %2611 = vmatprep.mubr.msk.bf16.mxu0 %vm3103_vm1, %v3102_v22 }
  0xf6   :  { %2597 = vmatprep.subr.bf16.mxu0 %v3102_v22 }
  0xf9   :  { %2598 = vmatpush3.bf16.msra.mxu0 %v3255_v23 }
  0xfa   :  { %2599 = vmatprep.subr.bf16.mxu0 %v3102_v22 }
  0xfd   :  { %2600 = vmatpush3.bf16.msra.mxu0 %v3261_v24 }
  0xfe   :  { %2601 = vmatprep.subr.bf16.mxu0 %v3102_v22 }
 0x101   :  { %2602 = vmatpush3.bf16.msra.mxu0 %v3269_v25 }
 0x102   :  { %2603 = vmatprep.subr.bf16.mxu0 %v3102_v22 }
 0x105   :  { %2604 = vmatpush3.bf16.msra.mxu0 %v3276_v26 }
 0x106   :  { %2605 = vmatprep.subr.bf16.mxu0 %v3102_v22 }
 0x109   :  { %2606 = vmatpush3.bf16.msra.mxu0 %v3283_v27 }
 0x10a   :  { %2607 = vmatprep.subr.bf16.mxu0 %v3102_v22 }
 0x10d   :  { %2608 = vmatpush3.bf16.msra.mxu0 %v3290_v28 }
 0x10e   :  { %2609 = vmatprep.subr.bf16.mxu0 %v3102_v22 }
 0x111   :  { %2610 = vmatpush3.bf16.msra.mxu0 %v3297_v29 }
 0x112   :  { %2635 = vmatprep.subr.bf16.mxu0 %v3102_v22 }
 0x194   :  { %v2549_v62 = vpop.f32.mrf.mxu0 }
 0x195   :  { %v3348_v63 = vadd.f32 %v2549_v62, %v2234_v61 }
 0x196   :  { %v268_v0 = vpop.f32.mrf.mxu0 }
 0x197   :  { %v269_v13 = vadd.f32 %v2234_v61, %v268_v0 }
 0x198   :  { %v2550_v1 = vpop.f32.mrf.mxu0 }
 0x199   :  { %v3350_v2 = vadd.f32 %v2550_v1, %v2234_v61 }
 0x19a   :  { %v271_v3 = vpop.f32.mrf.mxu0 }
 0x19b   :  { %v272_v4 = vadd.f32 %v2234_v61, %v271_v3 }
 0x19c   :  { %v2553_v5 = vpop.f32.mrf.mxu0 }
 0x19d   :  { %v3352_v6 = vadd.f32 %v2553_v5, %v2234_v61 }
 0x19e   :  { %v284_v7 = vpop.f32.mrf.mxu0 }
 0x19f   :  { %v3354_v8 = vadd.f32 %v2234_v61, %v284_v7 }
 0x1a0   :  { %v2554_v9 = vpop.f32.mrf.mxu0 }
 0x1a1   :  { %v3356_v10 = vadd.f32 %v2554_v9, %v2234_v61 }
 0x1a2   :  { %v287_v11 = vpop.f32.mrf.mxu0 }
 0x1a3   :  { %v3358_v12 = vadd.f32 %v2234_v61, %v287_v11 }
 0x1b4   :  { %v400_v14 = vpop.f32.mrf.mxu0 }
 0x1b5   :  { %v406_v15 = vadd.f32 %v400_v14, %v269_v13 }
 0x1b6   :  { %v2573_v16 = vpop.f32.mrf.mxu0 }
 0x1b7   :  { %v2251_v17 = vmul.f32 -1.442695, %v406_v15 }
 0x1b8   :  { %v403_v18 = vpop.f32.mrf.mxu0 }
 0x1b9   :  { %2974 = vpow2.f32 %v2251_v17 }
 0x1ba   :  { %v2574_v19 = vpop.f32.mrf.mxu0 }
 0x1c6   :  { %v2975_v20 = vpop.eup %2974 }
 0x1c7   :  { %v410_v30 = vadd.f32 1.0, %v2975_v20 }
 0x1c9   :  { %2976 = vrcp.f32 %v410_v30 }
 0x1ca   :  { %2978 = vtanh.f32 %v406_v15 }
 0x1d6   :  { %v2977_v31 = vpop.eup %2976 }
 0x1d7   :  { %418 = vrot.lane.b32.xlu1 %v2977_v31, %s3104_s23  ;;  %414 = vrot.lane.b32.xlu0 %v2977_v31, %s3105_s24  ;;  %v2979_v32 = vpop.eup %2978 }
 0x1db   :  { %416 = vrot.lane.b32.xlu0 %v2979_v32, %s3106_s25 }
 0x249   :  { %v415_v33 = vpop.permute.xlu0 %414  ;;  %v419_v40 = vpop.permute.xlu1 %418 }
 0x24a   :  { %v420_v36 = vmul.f32 %v415_v33, %v316_v34 }
 0x24d   :  { %v417_v35 = vpop.permute.xlu0 %416 }
 0x24e   :  { %v421_v37 = vmul.f32 %v2977_v31, %v417_v35 }
 0x250   :  { %v422_v38 = vadd.f32 %v421_v37, %v420_v36 }
 0x252   :  { %2980 = vtanh.f32 %v422_v38 }
 0x25f   :  { %v2981_v39 = vpop.eup %2980 }
 0x260   :  { %v3366_v41 = vmul.f32 %v2981_v39, %v419_v40 }
 0x262   :  { %v426_v42 = vpack.c.bf16 %v3366_v41, %v3366_v41 }
 0x264   :  { %2592 = vmatmul.mubr.bf16.vlgmr.msra.gmra.mxu1 %v426_v42 }
 0x265   :  { %2616 = vmatpush3.bf16.msra.mxu1 %v3246_v21  ;;  %2631 = vmatprep.mubr.msk.bf16.mxu1 %vm3103_vm1, %v3102_v22 }
 0x266   :  { %2617 = vmatprep.subr.bf16.mxu1 %v3102_v22 }
 0x269   :  { %2618 = vmatpush3.bf16.msra.mxu1 %v3255_v23 }
 0x26a   :  { %2619 = vmatprep.subr.bf16.mxu1 %v3102_v22 }
 0x26d   :  { %2620 = vmatpush3.bf16.msra.mxu1 %v3261_v24 }
 0x26e   :  { %2621 = vmatprep.subr.bf16.mxu1 %v3102_v22 }
 0x271   :  { %2622 = vmatpush3.bf16.msra.mxu1 %v3269_v25 }
 0x272   :  { %2623 = vmatprep.subr.bf16.mxu1 %v3102_v22 }
 0x275   :  { %2624 = vmatpush3.bf16.msra.mxu1 %v3276_v26 }
 0x276   :  { %2625 = vmatprep.subr.bf16.mxu1 %v3102_v22 }
 0x279   :  { %2626 = vmatpush3.bf16.msra.mxu1 %v3283_v27 }
 0x27a   :  { %2627 = vmatprep.subr.bf16.mxu1 %v3102_v22 }
 0x27d   :  { %2628 = vmatpush3.bf16.msra.mxu1 %v3290_v28 }
 0x27e   :  { %2629 = vmatprep.subr.bf16.mxu1 %v3102_v22 }
 0x281   :  { %2630 = vmatpush3.bf16.msra.mxu1 %v3297_v29 }
 0x282   :  { %2655 = vmatprep.subr.bf16.mxu1 %v3102_v22 }
 0x324   :  { %v461_v43 = vpop.f32.mrf.mxu1 }
 0x325   :  { %v467_v44 = vadd.f32 %v461_v43, %v272_v4 }
 0x326   :  { %v2593_v45 = vpop.f32.mrf.mxu1 }
 0x327   :  { %v2252_v46 = vmul.f32 -1.442695, %v467_v44  ;;  %2982 = vtanh.f32 %v467_v44 }
 0x328   :  { %v464_v47 = vpop.f32.mrf.mxu1 }
 0x329   :  { %2984 = vpow2.f32 %v2252_v46 }
 0x32a   :  { %v2594_v48 = vpop.f32.mrf.mxu1 }
 0x334   :  { %v2983_v49 = vpop.eup %2982 }
 0x335   :  { %477 = vrot.lane.b32.xlu0 %v2983_v49, %s3106_s25 }
 0x336   :  { %v2985_v50 = vpop.eup %2984 }
 0x337   :  { %v471_v51 = vadd.f32 1.0, %v2985_v50 }
 0x339   :  { %2986 = vrcp.f32 %v471_v51 }
 0x346   :  { %v2987_v52 = vpop.eup %2986 }
 0x347   :  { %475 = vrot.lane.b32.xlu1 %v2987_v52, %s3105_s24 }
 0x34b   :  { %479 = vrot.lane.b32.xlu1 %v2987_v52, %s3104_s23 }
 0x3a7   :  { %v478_v53 = vpop.permute.xlu0 %477 }
 0x3a8   :  { %v482_v55 = vmul.f32 %v2987_v52, %v478_v53 }
 0x3b9   :  { %v476_v54 = vpop.permute.xlu1 %475 }
 0x3ba   :  { %v481_v56 = vmul.f32 %v476_v54, %v422_v38 }
 0x3bc   :  { %v483_v57 = vadd.f32 %v482_v55, %v481_v56 }
 0x3bd   :  { %v480_v59 = vpop.permute.xlu1 %479 }
 0x3be   :  { %2988 = vtanh.f32 %v483_v57 }
 0x3cb   :  { %v2989_v58 = vpop.eup %2988 }
 0x3cc   :  { %v3391_v60 = vmul.f32 %v2989_v58, %v480_v59 }
 0x3ce   :  { %v487_v61 = vpack.c.bf16 %v3391_v60, %v3391_v60 }
 0x3d0   :  { %2612 = vmatmul.mubr.bf16.vlgmr.msra.gmra.mxu0 %v487_v61 }
 0x3d1   :  { %2636 = vmatpush3.bf16.msra.mxu0 %v3246_v21  ;;  %2651 = vmatprep.mubr.msk.bf16.mxu0 %vm3103_vm1, %v3102_v22 }
 0x3d2   :  { %2637 = vmatprep.subr.bf16.mxu0 %v3102_v22 }
 0x3d5   :  { %2638 = vmatpush3.bf16.msra.mxu0 %v3255_v23 }
 0x3d6   :  { %2639 = vmatprep.subr.bf16.mxu0 %v3102_v22 }
 0x3d9   :  { %2640 = vmatpush3.bf16.msra.mxu0 %v3261_v24 }
 0x3da   :  { %2641 = vmatprep.subr.bf16.mxu0 %v3102_v22 }
 0x3dd   :  { %2642 = vmatpush3.bf16.msra.mxu0 %v3269_v25 }
 0x3de   :  { %2643 = vmatprep.subr.bf16.mxu0 %v3102_v22 }
 0x3e1   :  { %2644 = vmatpush3.bf16.msra.mxu0 %v3276_v26 }
 0x3e2   :  { %2645 = vmatprep.subr.bf16.mxu0 %v3102_v22 }
 0x3e5   :  { %2646 = vmatpush3.bf16.msra.mxu0 %v3283_v27 }
 0x3e6   :  { %2647 = vmatprep.subr.bf16.mxu0 %v3102_v22 }
 0x3e9   :  { %2648 = vmatpush3.bf16.msra.mxu0 %v3290_v28 }
 0x3ea   :  { %2649 = vmatprep.subr.bf16.mxu0 %v3102_v22 }
 0x3ed   :  { %2650 = vmatpush3.bf16.msra.mxu0 %v3297_v29 }
 0x3ee   :  { %2675 = vmatprep.subr.bf16.mxu0 %v3102_v22 }
 0x490   :  { %v522_v62 = vpop.f32.mrf.mxu0 }
 0x491   :  { %v528_v0 = vadd.f32 %v522_v62, %v3348_v63 }
 0x492   :  { %v2613_v1 = vpop.f32.mrf.mxu0 }
 0x493   :  { %v2253_v3 = vmul.f32 -1.442695, %v528_v0  ;;  %2990 = vtanh.f32 %v528_v0 }
 0x494   :  { %v525_v4 = vpop.f32.mrf.mxu0 }
 0x495   :  { %2992 = vpow2.f32 %v2253_v3 }
 0x496   :  { %v2614_v5 = vpop.f32.mrf.mxu0 }
 0x4a0   :  { %v2991_v7 = vpop.eup %2990 }
 0x4a1   :  { %538 = vrot.lane.b32.xlu1 %v2991_v7, %s3106_s25 }
 0x4a2   :  { %v2993_v9 = vpop.eup %2992 }
 0x4a3   :  { %v532_v11 = vadd.f32 1.0, %v2993_v9 }
 0x4a5   :  { %2994 = vrcp.f32 %v532_v11 }
 0x4b2   :  { %v2995_v13 = vpop.eup %2994 }
 0x4b3   :  { %536 = vrot.lane.b32.xlu0 %v2995_v13, %s3105_s24 }
 0x4b7   :  { %540 = vrot.lane.b32.xlu0 %v2995_v13, %s3104_s23 }
 0x513   :  { %v539_v14 = vpop.permute.xlu1 %538 }
 0x514   :  { %v543_v63 = vmul.f32 %v2995_v13, %v539_v14 }
 0x525   :  { %v537_v15 = vpop.permute.xlu0 %536 }
 0x526   :  { %v542_v16 = vmul.f32 %v537_v15, %v483_v57 }
 0x528   :  { %v544_v17 = vadd.f32 %v543_v63, %v542_v16 }
 0x529   :  { %v541_v19 = vpop.permute.xlu0 %540 }
 0x52a   :  { %2996 = vtanh.f32 %v544_v17 }
 0x537   :  { %v2997_v18 = vpop.eup %2996 }
 0x538   :  { %v3417_v20 = vmul.f32 %v2997_v18, %v541_v19 }
 0x53a   :  { %v548_v30 = vpack.c.bf16 %v3417_v20, %v3417_v20 }
 0x53c   :  { %2632 = vmatmul.mubr.bf16.vlgmr.msra.gmra.mxu1 %v548_v30 }
 0x53d   :  { %2656 = vmatpush3.bf16.msra.mxu1 %v3246_v21  ;;  %2671 = vmatprep.mubr.msk.bf16.mxu1 %vm3103_vm1, %v3102_v22 }
 0x53e   :  { %2657 = vmatprep.subr.bf16.mxu1 %v3102_v22 }
 0x541   :  { %2658 = vmatpush3.bf16.msra.mxu1 %v3255_v23 }
 0x542   :  { %2659 = vmatprep.subr.bf16.mxu1 %v3102_v22 }
 0x545   :  { %2660 = vmatpush3.bf16.msra.mxu1 %v3261_v24 }
 0x546   :  { %2661 = vmatprep.subr.bf16.mxu1 %v3102_v22 }
 0x549   :  { %2662 = vmatpush3.bf16.msra.mxu1 %v3269_v25 }
 0x54a   :  { %2663 = vmatprep.subr.bf16.mxu1 %v3102_v22 }
 0x54d   :  { %2664 = vmatpush3.bf16.msra.mxu1 %v3276_v26 }
 0x54e   :  { %2665 = vmatprep.subr.bf16.mxu1 %v3102_v22 }
 0x551   :  { %2666 = vmatpush3.bf16.msra.mxu1 %v3283_v27 }
 0x552   :  { %2667 = vmatprep.subr.bf16.mxu1 %v3102_v22 }
 0x555   :  { %2668 = vmatpush3.bf16.msra.mxu1 %v3290_v28 }
 0x556   :  { %2669 = vmatprep.subr.bf16.mxu1 %v3102_v22 }
 0x559   :  { %2670 = vmatpush3.bf16.msra.mxu1 %v3297_v29 }
 0x55a   :  { %2695 = vmatprep.subr.bf16.mxu1 %v3102_v22 }
 0x5fc   :  { %v583_v31 = vpop.f32.mrf.mxu1 }
 0x5fd   :  { %v589_v32 = vadd.f32 %v583_v31, %v3350_v2  ;;  %v2951_v31 = vld [vmem:[%s4281_s7 + $0x70] sm:$0xff]  }
 0x5fe   :  { %v2633_v33 = vpop.f32.mrf.mxu1 }
 0x5ff   :  { %v2254_v34 = vmul.f32 -1.442695, %v589_v32  ;;  %2998 = vtanh.f32 %v589_v32  ;;  %v861_v32 = vpack.c.bf16 %v3391_v60, %v3366_v41  ;;  %v2952_v33 = vld [vmem:[%s4281_s7 + $0x68] sm:$0xff]   ;;  %v2954_v41 = vld [vmem:[%s4281_s7 + $0x58] sm:$0xff]   ;;  %v2955_v60 = vld [vmem:[%s4281_s7 + $0x50] sm:$0xff]  }
 0x600   :  { %v586_v35 = vpop.f32.mrf.mxu1 }
 0x601   :  { %3000 = vpow2.f32 %v2254_v34  ;;  %v2953_v34 = vld [vmem:[%s4281_s7 + $0x60] sm:$0xff]   ;;  %v2956_v35 = vld [vmem:[%s4281_s7 + $0x48] sm:$0xff]  }
 0x602   :  { %v2634_v36 = vpop.f32.mrf.mxu1 }
 0x603   :  { %v2957_v36 = vld [vmem:[%s4281_s7 + $0x40] sm:$0xff]  }
 0x60c   :  { %v2999_v37 = vpop.eup %2998 }
 0x60d   :  { %599 = vrot.lane.b32.xlu0 %v2999_v37, %s3106_s25 }
 0x60e   :  { %v3001_v38 = vpop.eup %3000 }
 0x60f   :  { %v593_v39 = vadd.f32 1.0, %v3001_v38 }
 0x611   :  { %3002 = vrcp.f32 %v593_v39 }
 0x61e   :  { %v3003_v40 = vpop.eup %3002 }
 0x61f   :  { %597 = vrot.lane.b32.xlu1 %v3003_v40, %s3105_s24 }
 0x623   :  { %601 = vrot.lane.b32.xlu1 %v3003_v40, %s3104_s23 }
 0x67f   :  { %v600_v42 = vpop.permute.xlu0 %599 }
 0x680   :  { %v604_v2 = vmul.f32 %v3003_v40, %v600_v42 }
 0x691   :  { %v598_v43 = vpop.permute.xlu1 %597 }
 0x692   :  { %v603_v44 = vmul.f32 %v598_v43, %v544_v17 }
 0x694   :  { %v605_v45 = vadd.f32 %v604_v2, %v603_v44 }
 0x695   :  { %v602_v47 = vpop.permute.xlu1 %601 }
 0x696   :  { %3004 = vtanh.f32 %v605_v45 }
 0x6a3   :  { %v3005_v46 = vpop.eup %3004 }
 0x6a4   :  { %v3443_v48 = vmul.f32 %v3005_v46, %v602_v47 }
 0x6a6   :  { %v609_v49 = vpack.c.bf16 %v3443_v48, %v3443_v48  ;;  %v862_v37 = vpack.c.bf16 %v3443_v48, %v3417_v20  ;;  %v3541_v48 = vld [vmem:[%s4282_s8 + $0x70] sm:$0xff]  }
 0x6a8   :  { %2652 = vmatmul.mubr.bf16.vlgmr.msra.gmra.mxu0 %v609_v49  ;;  %v3548_v49 = vld [vmem:[%s4282_s8 + $0x68] sm:$0xff]  }
 0x6a9   :  { %2676 = vmatpush3.bf16.msra.mxu0 %v3246_v21  ;;  %2691 = vmatprep.mubr.msk.bf16.mxu0 %vm3103_vm1, %v3102_v22 }
 0x6aa   :  { %2677 = vmatprep.subr.bf16.mxu0 %v3102_v22 }
 0x6ad   :  { %2678 = vmatpush3.bf16.msra.mxu0 %v3255_v23 }
 0x6ae   :  { %2679 = vmatprep.subr.bf16.mxu0 %v3102_v22 }
 0x6b1   :  { %2680 = vmatpush3.bf16.msra.mxu0 %v3261_v24 }
 0x6b2   :  { %2681 = vmatprep.subr.bf16.mxu0 %v3102_v22 }
 0x6b5   :  { %2682 = vmatpush3.bf16.msra.mxu0 %v3269_v25 }
 0x6b6   :  { %2683 = vmatprep.subr.bf16.mxu0 %v3102_v22 }
 0x6b9   :  { %2684 = vmatpush3.bf16.msra.mxu0 %v3276_v26 }
 0x6ba   :  { %2685 = vmatprep.subr.bf16.mxu0 %v3102_v22 }
 0x6bd   :  { %2686 = vmatpush3.bf16.msra.mxu0 %v3283_v27 }
 0x6be   :  { %2687 = vmatprep.subr.bf16.mxu0 %v3102_v22 }
 0x6c1   :  { %2688 = vmatpush3.bf16.msra.mxu0 %v3290_v28 }
 0x6c2   :  { %2689 = vmatprep.subr.bf16.mxu0 %v3102_v22 }
 0x6c5   :  { %2690 = vmatpush3.bf16.msra.mxu0 %v3297_v29 }
 0x768   :  { %v644_v50 = vpop.f32.mrf.mxu0 }
 0x769   :  { %v650_v51 = vadd.f32 %v644_v50, %v3354_v8  ;;  %v3555_v50 = vld [vmem:[%s4282_s8 + $0x60] sm:$0xff]  }
 0x76a   :  { %v2653_v52 = vpop.f32.mrf.mxu0 }
 0x76b   :  { %v2255_v53 = vmul.f32 -1.442695, %v650_v51  ;;  %3006 = vtanh.f32 %v650_v51  ;;  %v3562_v51 = vld [vmem:[%s4282_s8 + $0x58] sm:$0xff]   ;;  %v3569_v52 = vld [vmem:[%s4282_s8 + $0x50] sm:$0xff]  }
 0x76c   :  { %v647_v54 = vpop.f32.mrf.mxu0 }
 0x76d   :  { %3008 = vpow2.f32 %v2255_v53  ;;  %v3576_v53 = vld [vmem:[%s4282_s8 + $0x48] sm:$0xff]   ;;  %v3583_v54 = vld [vmem:[%s4282_s8 + $0x40] sm:$0xff]  }
 0x76e   :  { %v2654_v55 = vpop.f32.mrf.mxu0 }
 0x778   :  { %v3007_v56 = vpop.eup %3006 }
 0x779   :  { %660 = vrot.lane.b32.xlu1 %v3007_v56, %s3106_s25 }
 0x77a   :  { %v3009_v57 = vpop.eup %3008 }
 0x77b   :  { %v654_v58 = vadd.f32 1.0, %v3009_v57 }
 0x77d   :  { %3010 = vrcp.f32 %v654_v58 }
 0x78a   :  { %v3011_v59 = vpop.eup %3010 }
 0x78b   :  { %658 = vrot.lane.b32.xlu0 %v3011_v59, %s3105_s24 }
 0x78f   :  { %662 = vrot.lane.b32.xlu0 %v3011_v59, %s3104_s23 }
 0x7eb   :  { %v661_v61 = vpop.permute.xlu1 %660 }
 0x7ec   :  { %v665_v8 = vmul.f32 %v3011_v59, %v661_v61 }
 0x7fd   :  { %v659_v62 = vpop.permute.xlu0 %658 }
 0x7fe   :  { %v664_v0 = vmul.f32 %v659_v62, %v605_v45 }
 0x800   :  { %v666_v1 = vadd.f32 %v665_v8, %v664_v0 }
 0x801   :  { %v663_v4 = vpop.permute.xlu0 %662 }
 0x802   :  { %3012 = vtanh.f32 %v666_v1 }
 0x80f   :  { %v3013_v3 = vpop.eup %3012 }
 0x810   :  { %v3468_v5 = vmul.f32 %v3013_v3, %v663_v4 }
 0x812   :  { %v670_v7 = vpack.c.bf16 %v3468_v5, %v3468_v5 }
 0x814   :  { %2672 = vmatmul.mubr.bf16.vlgmr.msra.gmra.mxu1 %v670_v7 }
 0x815   :  { %2696 = vmatpush3.bf16.msra.mxu1 %v3246_v21  ;;  %2711 = vmatprep.mubr.msk.bf16.mxu1 %vm3103_vm1, %v3102_v22 }
 0x816   :  { %2697 = vmatprep.subr.bf16.mxu1 %v3102_v22 }
 0x819   :  { %2698 = vmatpush3.bf16.msra.mxu1 %v3255_v23 }
 0x81a   :  { %2699 = vmatprep.subr.bf16.mxu1 %v3102_v22 }
 0x81d   :  { %2700 = vmatpush3.bf16.msra.mxu1 %v3261_v24 }
 0x81e   :  { %2701 = vmatprep.subr.bf16.mxu1 %v3102_v22 }
 0x821   :  { %2702 = vmatpush3.bf16.msra.mxu1 %v3269_v25 }
 0x822   :  { %2703 = vmatprep.subr.bf16.mxu1 %v3102_v22 }
 0x825   :  { %2704 = vmatpush3.bf16.msra.mxu1 %v3276_v26 }
 0x826   :  { %2705 = vmatprep.subr.bf16.mxu1 %v3102_v22 }
 0x829   :  { %2706 = vmatpush3.bf16.msra.mxu1 %v3283_v27 }
 0x82a   :  { %2707 = vmatprep.subr.bf16.mxu1 %v3102_v22 }
 0x82d   :  { %2708 = vmatpush3.bf16.msra.mxu1 %v3290_v28 }
 0x82e   :  { %2709 = vmatprep.subr.bf16.mxu1 %v3102_v22 }
 0x831   :  { %2710 = vmatpush3.bf16.msra.mxu1 %v3297_v29  ;;  %v2950_v29 = vld [vmem:[%s4281_s7 + $0x78] sm:$0xff]  }
 0x832   :  { %2739 = vmatprep.subr.bf16.mxu1 %v3102_v22  ;;  %2715 = vmatprep.subr.bf16.mxu0 %v2950_v29 }
 0x8d4   :  { %v705_v21 = vpop.f32.mrf.mxu1 }
 0x8d5   :  { %v711_v23 = vadd.f32 %v705_v21, %v3358_v12 }
 0x8d6   :  { %v2673_v24 = vpop.f32.mrf.mxu1 }
 0x8d7   :  { %v2256_v25 = vmul.f32 -1.442695, %v711_v23  ;;  %3014 = vtanh.f32 %v711_v23 }
 0x8d8   :  { %v708_v26 = vpop.f32.mrf.mxu1 }
 0x8d9   :  { %3016 = vpow2.f32 %v2256_v25 }
 0x8da   :  { %v2674_v9 = vpop.f32.mrf.mxu1 }
 0x8e4   :  { %v3015_v27 = vpop.eup %3014 }
 0x8e5   :  { %721 = vrot.lane.b32.xlu0 %v3015_v27, %s3106_s25 }
 0x8e6   :  { %v3017_v11 = vpop.eup %3016 }
 0x8e7   :  { %v715_v28 = vadd.f32 1.0, %v3017_v11 }
 0x8e9   :  { %3018 = vrcp.f32 %v715_v28  ;;  %v3641_v28 = vld [vmem:[%s4285_s9 + $0x1] ss:$0 sm:$0xff] }
 0x8f6   :  { %v3019_v13 = vpop.eup %3018 }
 0x8f7   :  { %719 = vrot.lane.b32.xlu1 %v3019_v13, %s3105_s24 }
 0x8fb   :  { %723 = vrot.lane.b32.xlu1 %v3019_v13, %s3104_s23 }
 0x957   :  { %v722_v12 = vpop.permute.xlu0 %721 }
 0x958   :  { %v726_v15 = vmul.f32 %v3019_v13, %v722_v12 }
 0x969   :  { %v720_v14 = vpop.permute.xlu1 %719 }
 0x96a   :  { %v725_v63 = vmul.f32 %v720_v14, %v666_v1  ;;  %v2301_v1 = vld [vmem:[%s4284_s3 + $0x8] sm:$0xff] }
 0x96b   :  { %v1024_v3 = vpack.c.bf16 %v2301_v1, %v2301_v1 }
 0x96c   :  { %v3497_v16 = vadd.f32 %v726_v15, %v725_v63 }
 0x96d   :  { %v724_v18 = vpop.permute.xlu1 %723 }
 0x96e   :  { %3020 = vtanh.f32 %v3497_v16 }
 0x97b   :  { %v3021_v17 = vpop.eup %3020 }
 0x97c   :  { %v729_v19 = vmul.f32 %v3021_v17, %v724_v18 }
 0x97e   :  { %v731_v30 = vpack.c.bf16 %v729_v19, %v729_v19  ;;  %v863_v38 = vpack.c.bf16 %v729_v19, %v3468_v5 }
 0x980   :  { %2692 = vmatmul.mubr.bf16.vlgmr.msra.gmra.mxu0 %v731_v30 }
 0x981   :  { %2716 = vmatpush3.bf16.msra.mxu0 %v2950_v29  ;;  %2731 = vmatprep.mubr.bf16.mxu0 %v861_v32 }
 0x982   :  { %2717 = vmatprep.subr.bf16.mxu0 %v2951_v31 }
 0x985   :  { %2718 = vmatpush3.bf16.msra.mxu0 %v2951_v31 }
 0x986   :  { %2719 = vmatprep.subr.bf16.mxu0 %v2952_v33 }
 0x989   :  { %2720 = vmatpush3.bf16.msra.mxu0 %v2952_v33 }
 0x98a   :  { %2721 = vmatprep.subr.bf16.mxu0 %v2953_v34 }
 0x98d   :  { %2722 = vmatpush3.bf16.msra.mxu0 %v2953_v34 }
 0x98e   :  { %2723 = vmatprep.subr.bf16.mxu0 %v2954_v41 }
 0x991   :  { %2724 = vmatpush3.bf16.msra.mxu0 %v2954_v41 }
 0x992   :  { %2725 = vmatprep.subr.bf16.mxu0 %v2955_v60 }
 0x995   :  { %2726 = vmatpush3.bf16.msra.mxu0 %v2955_v60 }
 0x996   :  { %2727 = vmatprep.subr.bf16.mxu0 %v2956_v35 }
 0x999   :  { %2728 = vmatpush3.bf16.msra.mxu0 %v2956_v35  ;;  %v2302_v35 = vld [vmem:[%s4286_s4 + $0x8] sm:$0xff] }
 0x99a   :  { %2729 = vmatprep.subr.bf16.mxu0 %v2957_v36 }
 0x99d   :  { %2730 = vmatpush3.bf16.msra.mxu0 %v2957_v36 }
 0x99e   :  { %2759 = vmatprep.subr.bf16.mxu0 %v3102_v22 }
 0x9a0   :  { %2732 = vmatmul.mubr.bf16.vlgmr.msra.gmra.mxu0 %v862_v37 }
 0x9a1   :  { %2735 = vmatprep.mubr.bf16.mxu0 %v863_v38 }
 0xa40   :  { %v766_v39 = vpop.f32.mrf.mxu0 }
 0xa41   :  { %v772_v40 = vadd.f32 %v766_v39, %v3352_v6  ;;  %v3534_v6 = vld [vmem:[%s4282_s8 + $0x78] sm:$0xff]  }
 0xa42   :  { %v2693_v42 = vpop.f32.mrf.mxu0  ;;  %2760 = vmatpush3.bf16.msra.mxu0 %v3534_v6 }
 0xa43   :  { %v2257_v43 = vmul.f32 -1.442695, %v772_v40  ;;  %3022 = vtanh.f32 %v772_v40  ;;  %2761 = vmatprep.subr.bf16.mxu0 %v3102_v22 }
 0xa44   :  { %v769_v2 = vpop.f32.mrf.mxu0 }
 0xa45   :  { %3024 = vpow2.f32 %v2257_v43 }
 0xa46   :  { %v2694_v44 = vpop.f32.mrf.mxu0  ;;  %2762 = vmatpush3.bf16.msra.mxu0 %v3541_v48 }
 0xa47   :  { %2763 = vmatprep.subr.bf16.mxu0 %v3102_v22 }
 0xa4a   :  { %2764 = vmatpush3.bf16.msra.mxu0 %v3548_v49 }
 0xa4b   :  { %2765 = vmatprep.subr.bf16.mxu0 %v3102_v22 }
 0xa4e   :  { %2766 = vmatpush3.bf16.msra.mxu0 %v3555_v50 }
 0xa4f   :  { %2767 = vmatprep.subr.bf16.mxu0 %v3102_v22 }
 0xa50   :  { %v3023_v45 = vpop.eup %3022 }
 0xa51   :  { %782 = vrot.lane.b32.xlu1 %v3023_v45, %s3106_s25 }
 0xa52   :  { %v3025_v46 = vpop.eup %3024  ;;  %2768 = vmatpush3.bf16.msra.mxu0 %v3562_v51 }
 0xa53   :  { %v776_v20 = vadd.f32 1.0, %v3025_v46  ;;  %2769 = vmatprep.subr.bf16.mxu0 %v3102_v22 }
 0xa55   :  { %3026 = vrcp.f32 %v776_v20 }
 0xa56   :  { %2770 = vmatpush3.bf16.msra.mxu0 %v3569_v52 }
 0xa57   :  { %2771 = vmatprep.subr.bf16.mxu0 %v3102_v22 }
 0xa5a   :  { %2772 = vmatpush3.bf16.msra.mxu0 %v3576_v53 }
 0xa5b   :  { %2773 = vmatprep.subr.bf16.mxu0 %v3102_v22 }
 0xa5e   :  { %2774 = vmatpush3.bf16.msra.mxu0 %v3583_v54 }
 0xa5f   :  { %2799 = vmatprep.subr.bf16.mxu0 %v3102_v22 }
 0xa60   :  { %v3636_v27 = vpop.f32.mrf.mxu0 }
 0xa62   :  { %v3027_v47 = vpop.eup %3026  ;;  %v972_v11 = vpop.f32.mrf.mxu0 }
 0xa63   :  { %780 = vrot.lane.b32.xlu0 %v3027_v47, %s3105_s24 }
 0xa67   :  { %784 = vrot.lane.b32.xlu0 %v3027_v47, %s3104_s23 }
 0xac3   :  { %v783_v55 = vpop.permute.xlu1 %782 }
 0xac4   :  { %v787_v57 = vmul.f32 %v3027_v47, %v783_v55  ;;  %v3682_v47 = vpop.f32.mrf.mxu0 }
 0xac6   :  { %v975_v55 = vpop.f32.mrf.mxu0 }
 0xad5   :  { %v781_v56 = vpop.permute.xlu0 %780 }
 0xad6   :  { %v786_v58 = vmul.f32 %v781_v56, %v3497_v16 }
 0xad8   :  { %v3588_v59 = vadd.f32 %v787_v57, %v786_v58 }
 0xad9   :  { %v785_v62 = vpop.permute.xlu0 %784 }
 0xada   :  { %3028 = vtanh.f32 %v3588_v59 }
 0xae7   :  { %v3029_v61 = vpop.eup %3028 }
 0xae8   :  { %v3591_v8 = vmul.f32 %v3029_v61, %v785_v62  ;;  %v976_v61 = vadd.f32 %v3641_v28, %v975_v55 }
 0xaea   :  { %v792_v0 = vpack.c.bf16 %v3591_v8, %v3591_v8 }
 0xaec   :  { %2712 = vmatmul.mubr.bf16.vlgmr.msra.gmra.mxu1 %v792_v0 }
 0xaed   :  { %2740 = vmatpush3.bf16.msra.mxu1 %v3534_v6  ;;  %2755 = vmatprep.mubr.msk.bf16.mxu1 %vm3103_vm1, %v3102_v22 }
 0xaee   :  { %2741 = vmatprep.subr.bf16.mxu1 %v3102_v22 }
 0xaf1   :  { %2742 = vmatpush3.bf16.msra.mxu1 %v3541_v48 }
 0xaf2   :  { %2743 = vmatprep.subr.bf16.mxu1 %v3102_v22 }
 0xaf5   :  { %2744 = vmatpush3.bf16.msra.mxu1 %v3548_v49 }
 0xaf6   :  { %2745 = vmatprep.subr.bf16.mxu1 %v3102_v22 }
 0xaf9   :  { %2746 = vmatpush3.bf16.msra.mxu1 %v3555_v50 }
 0xafa   :  { %2747 = vmatprep.subr.bf16.mxu1 %v3102_v22 }
 0xafd   :  { %2748 = vmatpush3.bf16.msra.mxu1 %v3562_v51 }
 0xafe   :  { %2749 = vmatprep.subr.bf16.mxu1 %v3102_v22 }
 0xb01   :  { %2750 = vmatpush3.bf16.msra.mxu1 %v3569_v52 }
 0xb02   :  { %2751 = vmatprep.subr.bf16.mxu1 %v3102_v22 }
 0xb05   :  { %2752 = vmatpush3.bf16.msra.mxu1 %v3576_v53 }
 0xb06   :  { %2753 = vmatprep.subr.bf16.mxu1 %v3102_v22 }
 0xb09   :  { %2754 = vmatpush3.bf16.msra.mxu1 %v3583_v54 }
 0xb0a   :  { %2779 = vmatprep.subr.bf16.mxu1 %v3102_v22 }
 0xb0c   :  { %2756 = vmatmul.mubr.bf16.vlgmr.msra.gmra.mxu1 %v1024_v3 }
 0xb0d   :  { %2780 = vmatpush3.bf16.msra.mxu1 %v3534_v6  ;;  %2795 = vmatprep.mubr.msk.bf16.mxu1 %vm3103_vm1, %v3102_v22 }
 0xb0e   :  { %2781 = vmatprep.subr.bf16.mxu1 %v3102_v22 }
 0xb11   :  { %2782 = vmatpush3.bf16.msra.mxu1 %v3541_v48 }
 0xb12   :  { %2783 = vmatprep.subr.bf16.mxu1 %v3102_v22 }
 0xb15   :  { %2784 = vmatpush3.bf16.msra.mxu1 %v3548_v49 }
 0xb16   :  { %2785 = vmatprep.subr.bf16.mxu1 %v3102_v22 }
 0xb19   :  { %2786 = vmatpush3.bf16.msra.mxu1 %v3555_v50 }
 0xb1a   :  { %2787 = vmatprep.subr.bf16.mxu1 %v3102_v22 }
 0xb1d   :  { %2788 = vmatpush3.bf16.msra.mxu1 %v3562_v51 }
 0xb1e   :  { %2789 = vmatprep.subr.bf16.mxu1 %v3102_v22 }
 0xb21   :  { %2790 = vmatpush3.bf16.msra.mxu1 %v3569_v52 }
 0xb22   :  { %2791 = vmatprep.subr.bf16.mxu1 %v3102_v22 }
 0xb25   :  { %2792 = vmatpush3.bf16.msra.mxu1 %v3576_v53 }
 0xb26   :  { %2793 = vmatprep.subr.bf16.mxu1 %v3102_v22 }
 0xb29   :  { %2794 = vmatpush3.bf16.msra.mxu1 %v3583_v54 }
 0xb2a   :  { %2819 = vmatprep.subr.bf16.mxu1 %v3102_v22 }
 0xbac   :  { %v827_v4 = vpop.f32.mrf.mxu1 }
 0xbad   :  { %v833_v5 = vadd.f32 %v827_v4, %v3356_v10  ;;  %v973_v10 = vadd.f32 %v3641_v28, %v972_v11 }
 0xbae   :  { %v2713_v7 = vpop.f32.mrf.mxu1 }
 0xbaf   :  { %v2258_v21 = vmul.f32 -1.442695, %v833_v5  ;;  %3030 = vtanh.f32 %v833_v5 }
 0xbb0   :  { %v830_v23 = vpop.f32.mrf.mxu1 }
 0xbb1   :  { %3032 = vpow2.f32 %v2258_v21 }
 0xbb2   :  { %v2714_v24 = vpop.f32.mrf.mxu1 }
 0xbbc   :  { %v3031_v25 = vpop.eup %3030 }
 0xbbd   :  { %843 = vrot.lane.b32.xlu0 %v3031_v25, %s3106_s25 }
 0xbbe   :  { %v3033_v26 = vpop.eup %3032 }
 0xbbf   :  { %v837_v9 = vadd.f32 1.0, %v3033_v26 }
 0xbc1   :  { %3034 = vrcp.f32 %v837_v9 }
 0xbcc   :  { %v1107_v13 = vpop.f32.mrf.mxu1 }
 0xbcd   :  { %v1113_v29 = vadd.f32 %v1107_v13, %v973_v10 }
 0xbce   :  { %v3035_v12 = vpop.eup %3034  ;;  %v2757_v14 = vpop.f32.mrf.mxu1 }
 0xbcf   :  { %v2311_v15 = vmul.f32 -1.442695, %v1113_v29  ;;  %3036 = vtanh.f32 %v1113_v29  ;;  %841 = vrot.lane.b32.xlu1 %v3035_v12, %s3105_s24  ;;  %v981_v14 = vadd.f32 %v3636_v27, %v3641_v28 }
 0xbd0   :  { %v1110_v63 = vpop.f32.mrf.mxu1 }
 0xbd1   :  { %3038 = vpow2.f32 %v2311_v15 }
 0xbd2   :  { %v2758_v16 = vpop.f32.mrf.mxu1 }
 0xbdc   :  { %v3037_v17 = vpop.eup %3036 }
 0xbdd   :  { %1123 = vrot.lane.b32.xlu0 %v3037_v17, %s3106_s25 }
 0xbde   :  { %v3039_v18 = vpop.eup %3038 }
 0xbdf   :  { %v1117_v19 = vadd.f32 1.0, %v3039_v18 }
 0xbe1   :  { %3040 = vrcp.f32 %v1117_v19 }
 0xbee   :  { %v3041_v30 = vpop.eup %3040 }
 0xbef   :  { %1125 = vrot.lane.b32.xlu0 %v3041_v30, %s3104_s23  ;;  %1121 = vrot.lane.b32.xlu1 %v3041_v30, %s3105_s24 }
 0xbf3   :  { %845 = vrot.lane.b32.xlu1 %v3035_v12, %s3104_s23 }
 0xc2f   :  { %v844_v32 = vpop.permute.xlu0 %843 }
 0xc30   :  { %v848_v34 = vmul.f32 %v3035_v12, %v844_v32 }
 0xc41   :  { %v842_v31 = vpop.permute.xlu1 %841 }
 0xc42   :  { %v847_v33 = vmul.f32 %v842_v31, %v3588_v59 }
 0xc44   :  { %v849_v41 = vadd.f32 %v848_v34, %v847_v33 }
 0xc46   :  { %3042 = vtanh.f32 %v849_v41 }
 0xc4f   :  { %v1124_v60 = vpop.permute.xlu0 %1123 }
 0xc50   :  { %v1128_v37 = vmul.f32 %v3041_v30, %v1124_v60 }
 0xc53   :  { %v3043_v40 = vpop.eup %3042 }
 0xc61   :  { %v1122_v36 = vpop.permute.xlu1 %1121  ;;  %v1126_v45 = vpop.permute.xlu0 %1125 }
 0xc62   :  { %v1127_v38 = vmul.f32 %v2302_v35, %v1122_v36 }
 0xc64   :  { %v1129_v39 = vadd.f32 %v1128_v37, %v1127_v38 }
 0xc65   :  { %v846_v42 = vpop.permute.xlu1 %845 }
 0xc66   :  { %3044 = vtanh.f32 %v1129_v39  ;;  %v851_v43 = vmul.f32 %v3043_v40, %v846_v42  ;;  %v984_v40 = vadd.f32 %v3682_v47, %v3641_v28 }
 0xc68   :  { %v864_v2 = vpack.c.bf16 %v851_v43, %v3591_v8 }
 0xc6a   :  { %2736 = vmatmul.mubr.bf16.gmra.mxu0 %v864_v2 }
 0xc6b   :  { %2775 = vmatprep.mubr.msk.bf16.mxu0 %vm3103_vm1, %v3102_v22 }
 0xc73   :  { %v3045_v44 = vpop.eup %3044 }
 0xc74   :  { %v3656_v46 = vmul.f32 %v3045_v44, %v1126_v45 }
 0xc76   :  { %1132 = vst [vmem:[%s4287_s15] sm:$0xff] %v3656_v46  ;;  %v1133_v20 = vpack.c.bf16 %v3656_v46, %v3656_v46 }
 0xc78   :  { %2776 = vmatmul.mubr.bf16.vlgmr.msra.gmra.mxu0 %v1133_v20 }
 0xc79   :  { %2800 = vmatpush3.bf16.msra.mxu0 %v3534_v6  ;;  %2815 = vmatprep.mubr.msk.bf16.mxu0 %vm3103_vm1, %v3102_v22 }
 0xc7a   :  { %2801 = vmatprep.subr.bf16.mxu0 %v3102_v22 }
 0xc7d   :  { %2802 = vmatpush3.bf16.msra.mxu0 %v3541_v48 }
 0xc7e   :  { %2803 = vmatprep.subr.bf16.mxu0 %v3102_v22 }
 0xc81   :  { %2804 = vmatpush3.bf16.msra.mxu0 %v3548_v49 }
 0xc82   :  { %2805 = vmatprep.subr.bf16.mxu0 %v3102_v22 }
 0xc85   :  { %2806 = vmatpush3.bf16.msra.mxu0 %v3555_v50 }
 0xc86   :  { %2807 = vmatprep.subr.bf16.mxu0 %v3102_v22 }
 0xc89   :  { %2808 = vmatpush3.bf16.msra.mxu0 %v3562_v51 }
 0xc8a   :  { %2809 = vmatprep.subr.bf16.mxu0 %v3102_v22 }
 0xc8d   :  { %2810 = vmatpush3.bf16.msra.mxu0 %v3569_v52 }
 0xc8e   :  { %2811 = vmatprep.subr.bf16.mxu0 %v3102_v22 }
 0xc91   :  { %2812 = vmatpush3.bf16.msra.mxu0 %v3576_v53 }
 0xc92   :  { %2813 = vmatprep.subr.bf16.mxu0 %v3102_v22 }
 0xc95   :  { %2814 = vmatpush3.bf16.msra.mxu0 %v3583_v54 }
 0xc96   :  { %2839 = vmatprep.subr.bf16.mxu0 %v3102_v22 }
 0xd2a   :  { %v3684_v56 = vpop.f32.mrf.mxu0 }
 0xd2c   :  { %v3686_v57 = vpop.f32.mrf.mxu0 }
 0xd2e   :  { %v3688_v58 = vpop.f32.mrf.mxu0 }
 0xd30   :  { %v3690_v59 = vpop.f32.mrf.mxu0 }
 0xd38   :  { %v1168_v62 = vpop.f32.mrf.mxu0 }
 0xd39   :  { %v1174_v8 = vadd.f32 %v1168_v62, %v976_v61 }
 0xd3a   :  { %v2777_v0 = vpop.f32.mrf.mxu0 }
 0xd3b   :  { %v2312_v1 = vmul.f32 -1.442695, %v1174_v8  ;;  %3046 = vtanh.f32 %v1174_v8 }
 0xd3c   :  { %v1171_v3 = vpop.f32.mrf.mxu0 }
 0xd3d   :  { %3048 = vpow2.f32 %v2312_v1 }
 0xd3e   :  { %v2778_v4 = vpop.f32.mrf.mxu0 }
 0xd48   :  { %v3047_v5 = vpop.eup %3046 }
 0xd49   :  { %1184 = vrot.lane.b32.xlu0 %v3047_v5, %s3106_s25 }
 0xd4a   :  { %v3049_v7 = vpop.eup %3048 }
 0xd4b   :  { %v1178_v21 = vadd.f32 1.0, %v3049_v7 }
 0xd4d   :  { %3050 = vrcp.f32 %v1178_v21 }
 0xd5a   :  { %v3051_v23 = vpop.eup %3050 }
 0xd5b   :  { %1182 = vrot.lane.b32.xlu1 %v3051_v23, %s3105_s24 }
 0xd5f   :  { %1186 = vrot.lane.b32.xlu1 %v3051_v23, %s3104_s23 }
 0xdbb   :  { %v1185_v24 = vpop.permute.xlu0 %1184 }
 0xdbc   :  { %v1189_v26 = vmul.f32 %v3051_v23, %v1185_v24  ;;  %v989_v24 = vadd.f32 %v3641_v28, %v3686_v57 }
 0xdcd   :  { %v1183_v25 = vpop.permute.xlu1 %1182 }
 0xdce   :  { %v1188_v9 = vmul.f32 %v1183_v25, %v1129_v39 }
 0xdd0   :  { %v1190_v11 = vadd.f32 %v1189_v26, %v1188_v9 }
 0xdd1   :  { %v1187_v13 = vpop.permute.xlu1 %1186 }
 0xdd2   :  { %3052 = vtanh.f32 %v1190_v11 }
 0xddf   :  { %v3053_v10 = vpop.eup %3052 }
 0xde0   :  { %v3696_v29 = vmul.f32 %v3053_v10, %v1187_v13 }
 0xde2   :  { %1193 = vst [vmem:[%s4287_s15 + $0x8] sm:$0xff] %v3696_v29  ;;  %v1194_v12 = vpack.c.bf16 %v3696_v29, %v3696_v29 }
 0xde4   :  { %2796 = vmatmul.mubr.bf16.vlgmr.msra.gmra.mxu1 %v1194_v12 }
 0xde5   :  { %2820 = vmatpush3.bf16.msra.mxu1 %v3534_v6  ;;  %2835 = vmatprep.mubr.msk.bf16.mxu1 %vm3103_vm1, %v3102_v22 }
 0xde6   :  { %2821 = vmatprep.subr.bf16.mxu1 %v3102_v22 }
 0xde9   :  { %2822 = vmatpush3.bf16.msra.mxu1 %v3541_v48 }
 0xdea   :  { %2823 = vmatprep.subr.bf16.mxu1 %v3102_v22 }
 0xded   :  { %2824 = vmatpush3.bf16.msra.mxu1 %v3548_v49 }
 0xdee   :  { %2825 = vmatprep.subr.bf16.mxu1 %v3102_v22 }
 0xdf1   :  { %2826 = vmatpush3.bf16.msra.mxu1 %v3555_v50 }
 0xdf2   :  { %2827 = vmatprep.subr.bf16.mxu1 %v3102_v22 }
 0xdf5   :  { %2828 = vmatpush3.bf16.msra.mxu1 %v3562_v51 }
 0xdf6   :  { %2829 = vmatprep.subr.bf16.mxu1 %v3102_v22 }
 0xdf9   :  { %2830 = vmatpush3.bf16.msra.mxu1 %v3569_v52 }
 0xdfa   :  { %2831 = vmatprep.subr.bf16.mxu1 %v3102_v22 }
 0xdfd   :  { %2832 = vmatpush3.bf16.msra.mxu1 %v3576_v53 }
 0xdfe   :  { %2833 = vmatprep.subr.bf16.mxu1 %v3102_v22 }
 0xe01   :  { %2834 = vmatpush3.bf16.msra.mxu1 %v3583_v54 }
 0xe02   :  { %2859 = vmatprep.subr.bf16.mxu1 %v3102_v22 }
 0xea4   :  { %v1229_v15 = vpop.f32.mrf.mxu1 }
 0xea5   :  { %v1235_v63 = vadd.f32 %v1229_v15, %v981_v14 }
 0xea6   :  { %v2797_v16 = vpop.f32.mrf.mxu1 }
 0xea7   :  { %v2313_v17 = vmul.f32 -1.442695, %v1235_v63  ;;  %3054 = vtanh.f32 %v1235_v63 }
 0xea8   :  { %v1232_v18 = vpop.f32.mrf.mxu1 }
 0xea9   :  { %3056 = vpow2.f32 %v2313_v17 }
 0xeaa   :  { %v2798_v19 = vpop.f32.mrf.mxu1 }
 0xeb4   :  { %v3055_v30 = vpop.eup %3054 }
 0xeb5   :  { %1245 = vrot.lane.b32.xlu1 %v3055_v30, %s3106_s25 }
 0xeb6   :  { %v3057_v31 = vpop.eup %3056 }
 0xeb7   :  { %v1239_v32 = vadd.f32 1.0, %v3057_v31 }
 0xeb9   :  { %3058 = vrcp.f32 %v1239_v32 }
 0xec6   :  { %v3059_v33 = vpop.eup %3058 }
 0xec7   :  { %1243 = vrot.lane.b32.xlu0 %v3059_v33, %s3105_s24 }
 0xecb   :  { %1247 = vrot.lane.b32.xlu0 %v3059_v33, %s3104_s23 }
 0xf27   :  { %v1246_v27 = vpop.permute.xlu1 %1245 }
 0xf28   :  { %v1250_v41 = vmul.f32 %v3059_v33, %v1246_v27 }
 0xf39   :  { %v1244_v34 = vpop.permute.xlu0 %1243 }
 0xf3a   :  { %v1249_v60 = vmul.f32 %v1244_v34, %v1190_v11 }
 0xf3c   :  { %v1251_v35 = vadd.f32 %v1250_v41, %v1249_v60 }
 0xf3d   :  { %v1248_v37 = vpop.permute.xlu0 %1247 }
 0xf3e   :  { %3060 = vtanh.f32 %v1251_v35 }
 0xf4b   :  { %v3061_v36 = vpop.eup %3060 }
 0xf4c   :  { %v3727_v38 = vmul.f32 %v3061_v36, %v1248_v37 }
 0xf4e   :  { %1254 = vst [vmem:[%s4287_s15 + $0x10] sm:$0xff] %v3727_v38  ;;  %v1255_v39 = vpack.c.bf16 %v3727_v38, %v3727_v38 }
 0xf50   :  { %2816 = vmatmul.mubr.bf16.vlgmr.msra.gmra.mxu0 %v1255_v39 }
 0xf51   :  { %2840 = vmatpush3.bf16.msra.mxu0 %v3534_v6  ;;  %2855 = vmatprep.mubr.msk.bf16.mxu0 %vm3103_vm1, %v3102_v22 }
 0xf52   :  { %2841 = vmatprep.subr.bf16.mxu0 %v3102_v22 }
 0xf55   :  { %2842 = vmatpush3.bf16.msra.mxu0 %v3541_v48 }
 0xf56   :  { %2843 = vmatprep.subr.bf16.mxu0 %v3102_v22 }
 0xf59   :  { %2844 = vmatpush3.bf16.msra.mxu0 %v3548_v49 }
 0xf5a   :  { %2845 = vmatprep.subr.bf16.mxu0 %v3102_v22 }
 0xf5d   :  { %2846 = vmatpush3.bf16.msra.mxu0 %v3555_v50 }
 0xf5e   :  { %2847 = vmatprep.subr.bf16.mxu0 %v3102_v22 }
 0xf61   :  { %2848 = vmatpush3.bf16.msra.mxu0 %v3562_v51 }
 0xf62   :  { %2849 = vmatprep.subr.bf16.mxu0 %v3102_v22 }
 0xf65   :  { %2850 = vmatpush3.bf16.msra.mxu0 %v3569_v52 }
 0xf66   :  { %2851 = vmatprep.subr.bf16.mxu0 %v3102_v22 }
 0xf69   :  { %2852 = vmatpush3.bf16.msra.mxu0 %v3576_v53 }
 0xf6a   :  { %2853 = vmatprep.subr.bf16.mxu0 %v3102_v22 }
 0xf6d   :  { %2854 = vmatpush3.bf16.msra.mxu0 %v3583_v54 }
 0xf6e   :  { %2879 = vmatprep.subr.bf16.mxu0 %v3102_v22 }
0x1010   :  { %v1290_v42 = vpop.f32.mrf.mxu0 }
0x1011   :  { %v1296_v43 = vadd.f32 %v1290_v42, %v984_v40 }
0x1012   :  { %v2817_v2 = vpop.f32.mrf.mxu0 }
0x1013   :  { %v2314_v44 = vmul.f32 -1.442695, %v1296_v43  ;;  %3062 = vtanh.f32 %v1296_v43 }
0x1014   :  { %v1293_v45 = vpop.f32.mrf.mxu0 }
0x1015   :  { %3064 = vpow2.f32 %v2314_v44  ;;  %v2967_v44 = vld [vmem:[%s4288_s10 + $0x30] sm:$0xff]   ;;  %v1568_v45 = vpack.c.bf16 %v3696_v29, %v3656_v46  ;;  %v2970_v46 = vld [vmem:[%s4288_s10 + $0x18] sm:$0xff]  }
0x1016   :  { %v2818_v20 = vpop.f32.mrf.mxu0  ;;  %v2971_v29 = vld [vmem:[%s4288_s10 + $0x10] sm:$0xff]  }
0x1017   :  { %v2968_v20 = vld [vmem:[%s4288_s10 + $0x28] sm:$0xff]  }
0x1020   :  { %v3063_v55 = vpop.eup %3062 }
0x1021   :  { %1306 = vrot.lane.b32.xlu0 %v3063_v55, %s3106_s25  ;;  %v2969_v55 = vld [vmem:[%s4288_s10 + $0x20] sm:$0xff]  }
0x1022   :  { %v3065_v61 = vpop.eup %3064 }
0x1023   :  { %v1300_v62 = vadd.f32 1.0, %v3065_v61  ;;  %v2972_v61 = vld [vmem:[%s4288_s10 + $0x8] sm:$0xff]  }
0x1025   :  { %3066 = vrcp.f32 %v1300_v62  ;;  %v2973_v62 = vld [vmem:[%s4288_s10] sm:$0xff]  }
0x1032   :  { %v3067_v8 = vpop.eup %3066 }
0x1033   :  { %1304 = vrot.lane.b32.xlu1 %v3067_v8, %s3105_s24 }
0x1037   :  { %1308 = vrot.lane.b32.xlu1 %v3067_v8, %s3104_s23 }
0x1093   :  { %v1307_v47 = vpop.permute.xlu0 %1306 }
0x1094   :  { %v1311_v1 = vmul.f32 %v3067_v8, %v1307_v47 }
0x10a5   :  { %v1305_v0 = vpop.permute.xlu1 %1304 }
0x10a6   :  { %v1310_v3 = vmul.f32 %v1305_v0, %v1251_v35  ;;  %v997_v0 = vadd.f32 %v3684_v56, %v3641_v28 }
0x10a8   :  { %v1312_v4 = vadd.f32 %v1311_v1, %v1310_v3 }
0x10a9   :  { %v1309_v7 = vpop.permute.xlu1 %1308 }
0x10aa   :  { %3068 = vtanh.f32 %v1312_v4 }
0x10b7   :  { %v3069_v5 = vpop.eup %3068 }
0x10b8   :  { %v3758_v21 = vmul.f32 %v3069_v5, %v1309_v7 }
0x10ba   :  { %1315 = vst [vmem:[%s4287_s15 + $0x18] sm:$0xff] %v3758_v21  ;;  %v1316_v23 = vpack.c.bf16 %v3758_v21, %v3758_v21  ;;  %v1569_v8 = vpack.c.bf16 %v3758_v21, %v3727_v38 }
0x10bc   :  { %2836 = vmatmul.mubr.bf16.vlgmr.msra.gmra.mxu1 %v1316_v23 }
0x10bd   :  { %2860 = vmatpush3.bf16.msra.mxu1 %v3534_v6  ;;  %2875 = vmatprep.mubr.msk.bf16.mxu1 %vm3103_vm1, %v3102_v22 }
0x10be   :  { %2861 = vmatprep.subr.bf16.mxu1 %v3102_v22 }
0x10c1   :  { %2862 = vmatpush3.bf16.msra.mxu1 %v3541_v48 }
0x10c2   :  { %2863 = vmatprep.subr.bf16.mxu1 %v3102_v22 }
0x10c5   :  { %2864 = vmatpush3.bf16.msra.mxu1 %v3548_v49 }
0x10c6   :  { %2865 = vmatprep.subr.bf16.mxu1 %v3102_v22 }
0x10c9   :  { %2866 = vmatpush3.bf16.msra.mxu1 %v3555_v50 }
0x10ca   :  { %2867 = vmatprep.subr.bf16.mxu1 %v3102_v22 }
0x10cd   :  { %2868 = vmatpush3.bf16.msra.mxu1 %v3562_v51 }
0x10ce   :  { %2869 = vmatprep.subr.bf16.mxu1 %v3102_v22 }
0x10d1   :  { %2870 = vmatpush3.bf16.msra.mxu1 %v3569_v52 }
0x10d2   :  { %2871 = vmatprep.subr.bf16.mxu1 %v3102_v22 }
0x10d5   :  { %2872 = vmatpush3.bf16.msra.mxu1 %v3576_v53 }
0x10d6   :  { %2873 = vmatprep.subr.bf16.mxu1 %v3102_v22 }
0x10d9   :  { %2874 = vmatpush3.bf16.msra.mxu1 %v3583_v54 }
0x117c   :  { %v1351_v25 = vpop.f32.mrf.mxu1 }
0x117d   :  { %v1357_v26 = vadd.f32 %v1351_v25, %v989_v24 }
0x117e   :  { %v2837_v9 = vpop.f32.mrf.mxu1 }
0x117f   :  { %v2315_v11 = vmul.f32 -1.442695, %v1357_v26  ;;  %3070 = vtanh.f32 %v1357_v26 }
0x1180   :  { %v1354_v10 = vpop.f32.mrf.mxu1 }
0x1181   :  { %3072 = vpow2.f32 %v2315_v11 }
0x1182   :  { %v2838_v13 = vpop.f32.mrf.mxu1 }
0x118c   :  { %v3071_v12 = vpop.eup %3070 }
0x118d   :  { %1367 = vrot.lane.b32.xlu1 %v3071_v12, %s3106_s25 }
0x118e   :  { %v3073_v14 = vpop.eup %3072 }
0x118f   :  { %v1361_v15 = vadd.f32 1.0, %v3073_v14 }
0x1191   :  { %3074 = vrcp.f32 %v1361_v15 }
0x119e   :  { %v3075_v63 = vpop.eup %3074 }
0x119f   :  { %1365 = vrot.lane.b32.xlu0 %v3075_v63, %s3105_s24 }
0x11a3   :  { %1369 = vrot.lane.b32.xlu0 %v3075_v63, %s3104_s23 }
0x11ff   :  { %v1368_v57 = vpop.permute.xlu1 %1367 }
0x1200   :  { %v1372_v17 = vmul.f32 %v3075_v63, %v1368_v57  ;;  %v3107_v63 = vmov 8   ;;  %v1000_v57 = vadd.f32 %v3688_v58, %v3641_v28 }
0x1201   :  { %2931 = vset.pattern.permute.xlu0 %v3107_v63  ;;  %2932 = vset.pattern.permute.xlu1 %v3107_v63  ;;  %v3961_v63 = vld [vmem:[%s4290_s1 + $0x28] sm:$0xff] }
0x1211   :  { %v1366_v16 = vpop.permute.xlu0 %1365 }
0x1212   :  { %v1371_v18 = vmul.f32 %v1366_v16, %v1312_v4 }
0x1214   :  { %v1373_v19 = vadd.f32 %v1372_v17, %v1371_v18 }
0x1215   :  { %v1370_v31 = vpop.permute.xlu0 %1369 }
0x1216   :  { %3076 = vtanh.f32 %v1373_v19 }
0x1223   :  { %v3077_v30 = vpop.eup %3076 }
0x1224   :  { %v3788_v32 = vmul.f32 %v3077_v30, %v1370_v31 }
0x1226   :  { %1376 = vst [vmem:[%s4287_s15 + $0x20] sm:$0xff] %v3788_v32  ;;  %v1377_v33 = vpack.c.bf16 %v3788_v32, %v3788_v32 }
0x1228   :  { %2856 = vmatmul.mubr.bf16.vlgmr.msra.gmra.mxu0 %v1377_v33 }
0x1229   :  { %2880 = vmatpush3.bf16.msra.mxu0 %v3534_v6  ;;  %2895 = vmatprep.mubr.msk.bf16.mxu0 %vm3103_vm1, %v3102_v22  ;;  %v992_v6 = vadd.f32 %v3641_v28, %v3690_v59 }
0x122a   :  { %2881 = vmatprep.subr.bf16.mxu0 %v3102_v22 }
0x122d   :  { %2882 = vmatpush3.bf16.msra.mxu0 %v3541_v48 }
0x122e   :  { %2883 = vmatprep.subr.bf16.mxu0 %v3102_v22 }
0x1231   :  { %2884 = vmatpush3.bf16.msra.mxu0 %v3548_v49 }
0x1232   :  { %2885 = vmatprep.subr.bf16.mxu0 %v3102_v22 }
0x1235   :  { %2886 = vmatpush3.bf16.msra.mxu0 %v3555_v50 }
0x1236   :  { %2887 = vmatprep.subr.bf16.mxu0 %v3102_v22 }
0x1239   :  { %2888 = vmatpush3.bf16.msra.mxu0 %v3562_v51 }
0x123a   :  { %2889 = vmatprep.subr.bf16.mxu0 %v3102_v22 }
0x123d   :  { %2890 = vmatpush3.bf16.msra.mxu0 %v3569_v52 }
0x123e   :  { %2891 = vmatprep.subr.bf16.mxu0 %v3102_v22 }
0x1241   :  { %2892 = vmatpush3.bf16.msra.mxu0 %v3576_v53 }
0x1242   :  { %2893 = vmatprep.subr.bf16.mxu0 %v3102_v22 }
0x1245   :  { %2894 = vmatpush3.bf16.msra.mxu0 %v3583_v54  ;;  %v2966_v54 = vld [vmem:[%s4288_s10 + $0x38] sm:$0xff]  }
0x1246   :  { %2899 = vmatprep.subr.bf16.mxu1 %v2966_v54 }
0x12e8   :  { %v1412_v48 = vpop.f32.mrf.mxu0 }
0x12e9   :  { %v1418_v49 = vadd.f32 %v1412_v48, %v992_v6 }
0x12ea   :  { %v2857_v50 = vpop.f32.mrf.mxu0 }
0x12eb   :  { %v2316_v27 = vmul.f32 -1.442695, %v1418_v49  ;;  %3078 = vtanh.f32 %v1418_v49  ;;  %v3869_v49 = vld [vmem:[%s4289_s11] ss:$0 sm:$0xff] }
0x12ec   :  { %v1415_v51 = vpop.f32.mrf.mxu0 }
0x12ed   :  { %3080 = vpow2.f32 %v2316_v27 }
0x12ee   :  { %v2858_v34 = vpop.f32.mrf.mxu0 }
0x12f8   :  { %v3079_v52 = vpop.eup %3078 }
0x12f9   :  { %1428 = vrot.lane.b32.xlu0 %v3079_v52, %s3106_s25 }
0x12fa   :  { %v3081_v41 = vpop.eup %3080 }
0x12fb   :  { %v1422_v53 = vadd.f32 1.0, %v3081_v41 }
0x12fd   :  { %3082 = vrcp.f32 %v1422_v53 }
0x130a   :  { %v3083_v60 = vpop.eup %3082 }
0x130b   :  { %1426 = vrot.lane.b32.xlu1 %v3083_v60, %s3105_s24 }
0x130f   :  { %1430 = vrot.lane.b32.xlu1 %v3083_v60, %s3104_s23 }
0x136b   :  { %v1429_v59 = vpop.permute.xlu0 %1428 }
0x136c   :  { %v1433_v36 = vmul.f32 %v3083_v60, %v1429_v59  ;;  %v3880_v60 = vld [vmem:[%s4290_s1] sm:$0xff] }
0x137d   :  { %v1427_v35 = vpop.permute.xlu1 %1426 }
0x137e   :  { %v1432_v37 = vmul.f32 %v1427_v35, %v1373_v19  ;;  %v3886_v35 = vld [vmem:[%s4290_s1 + $0x18] sm:$0xff] }
0x1380   :  { %v1434_v39 = vadd.f32 %v1433_v36, %v1432_v37 }
0x1381   :  { %v1431_v42 = vpop.permute.xlu1 %1430 }
0x1382   :  { %3084 = vtanh.f32 %v1434_v39 }
0x138f   :  { %v3085_v40 = vpop.eup %3084 }
0x1390   :  { %v1436_v43 = vmul.f32 %v3085_v40, %v1431_v42 }
0x1392   :  { %1437 = vst [vmem:[%s4287_s15 + $0x28] sm:$0xff] %v1436_v43  ;;  %v1438_v2 = vpack.c.bf16 %v1436_v43, %v1436_v43  ;;  %v1570_v47 = vpack.c.bf16 %v1436_v43, %v3788_v32 }
0x1394   :  { %2876 = vmatmul.mubr.bf16.vlgmr.msra.gmra.mxu1 %v1438_v2 }
0x1395   :  { %2900 = vmatpush3.bf16.msra.mxu1 %v2966_v54  ;;  %2915 = vmatprep.mubr.bf16.mxu1 %v1568_v45 }
0x1396   :  { %2901 = vmatprep.subr.bf16.mxu1 %v2967_v44 }
0x1399   :  { %2902 = vmatpush3.bf16.msra.mxu1 %v2967_v44 }
0x139a   :  { %2903 = vmatprep.subr.bf16.mxu1 %v2968_v20 }
0x139d   :  { %2904 = vmatpush3.bf16.msra.mxu1 %v2968_v20  ;;  %v3906_v20 = vld [vmem:[%s4290_s1 + $0x8] sm:$0xff] }
0x139e   :  { %2905 = vmatprep.subr.bf16.mxu1 %v2969_v55 }
0x13a1   :  { %2906 = vmatpush3.bf16.msra.mxu1 %v2969_v55 }
0x13a2   :  { %2907 = vmatprep.subr.bf16.mxu1 %v2970_v46 }
0x13a5   :  { %2908 = vmatpush3.bf16.msra.mxu1 %v2970_v46 }
0x13a6   :  { %2909 = vmatprep.subr.bf16.mxu1 %v2971_v29 }
0x13a9   :  { %2910 = vmatpush3.bf16.msra.mxu1 %v2971_v29  ;;  %v3912_v29 = vld [vmem:[%s4290_s1 + $0x10] sm:$0xff] }
0x13aa   :  { %2911 = vmatprep.subr.bf16.mxu1 %v2972_v61 }
0x13ad   :  { %2912 = vmatpush3.bf16.msra.mxu1 %v2972_v61 }
0x13ae   :  { %2913 = vmatprep.subr.bf16.mxu1 %v2973_v62 }
0x13b1   :  { %2914 = vmatpush3.bf16.msra.mxu1 %v2973_v62 }
0x13b4   :  { %2916 = vmatmul.mubr.bf16.vlgmr.msra.gmra.mxu1 %v1569_v8 }
0x13b5   :  { %2919 = vmatprep.mubr.bf16.mxu1 %v1570_v47 }
0x1454   :  { %v1473_v1 = vpop.f32.mrf.mxu1 }
0x1455   :  { %v1479_v3 = vadd.f32 %v1473_v1, %v997_v0 }
0x1456   :  { %v2877_v4 = vpop.f32.mrf.mxu1 }
0x1457   :  { %v2317_v5 = vmul.f32 -1.442695, %v1479_v3  ;;  %3086 = vtanh.f32 %v1479_v3 }
0x1458   :  { %v1476_v7 = vpop.f32.mrf.mxu1 }
0x1459   :  { %3088 = vpow2.f32 %v2317_v5 }
0x145a   :  { %v2878_v23 = vpop.f32.mrf.mxu1 }
0x145b   :  { %v1782_v23 = vlaneseq }
0x1464   :  { %v3087_v24 = vpop.eup %3086 }
0x1465   :  { %1489 = vrot.lane.b32.xlu1 %v3087_v24, %s3106_s25 }
0x1466   :  { %v3089_v25 = vpop.eup %3088 }
0x1467   :  { %v1483_v38 = vadd.f32 1.0, %v3089_v25 }
0x1469   :  { %3090 = vrcp.f32 %v1483_v38 }
0x1474   :  { %v2917_v32 = vpop.f32.mrf.mxu1 }
0x1475   :  { %v1686_v41 = vadd.f32 %v2917_v32, %v3869_v49 }
0x1476   :  { %v3091_v21 = vpop.eup %3090  ;;  %v1677_v6 = vpop.f32.mrf.mxu1 }
0x1477   :  { %1487 = vrot.lane.b32.xlu0 %v3091_v21, %s3105_s24  ;;  %v1678_v28 = vadd.f32 %v3869_v49, %v1677_v6  ;;  %v1718_v47 = vmul.f32 %v3912_v29, %v1686_v41 }
0x1478   :  { %v2918_v50 = vpop.f32.mrf.mxu1 }
0x1479   :  { %v1689_v27 = vadd.f32 %v2918_v50, %v3869_v49  ;;  %v1716_v54 = vmul.f32 %v3880_v60, %v1678_v28 }
0x147a   :  { %v1680_v34 = vpop.f32.mrf.mxu1 }
0x147b   :  { %1491 = vrot.lane.b32.xlu0 %v3091_v21, %s3104_s23  ;;  %v1681_v52 = vadd.f32 %v3869_v49, %v1680_v34  ;;  %v1719_v37 = vmul.f32 %v3886_v35, %v1689_v27 }
0x147d   :  { %v1717_v55 = vmul.f32 %v3906_v20, %v1681_v52 }
0x14d7   :  { %v1490_v56 = vpop.permute.xlu1 %1489 }
0x14d8   :  { %v1494_v9 = vmul.f32 %v3091_v21, %v1490_v56  ;;  %v3937_v56 = vshrl.u32 %v1782_v23, 7 }
0x14da   :  { %vm1954_vm3 = vcmp.lt.s32.totalorder %v3937_v56, 2 }
0x14e9   :  { %v1488_v26 = vpop.permute.xlu0 %1487 }
0x14ea   :  { %v1493_v11 = vmul.f32 %v1488_v26, %v1434_v39  ;;  %v1793_v26 = vsub.s32 1, %v3937_v56 }
0x14ec   :  { %v1495_v10 = vadd.f32 %v1494_v9, %v1493_v11  ;;  %v3943_v9 = vld [vmem:[%s4292_s2] sm:$0xff] }
0x14ed   :  { %v1492_v12 = vpop.permute.xlu0 %1491 }
0x14ee   :  { %3092 = vtanh.f32 %v1495_v10 }
0x14fb   :  { %v3093_v13 = vpop.eup %3092 }
0x14fc   :  { %v3855_v14 = vmul.f32 %v3093_v13, %v1492_v12  ;;  %v3950_v13 = vld [vmem:[%s4290_s1 + $0x20] sm:$0xff] }
0x14fe   :  { %1498 = vst [vmem:[%s4287_s15 + $0x30] sm:$0xff] %v3855_v14  ;;  %v1499_v15 = vpack.c.bf16 %v3855_v14, %v3855_v14 }
0x1500   :  { %2896 = vmatmul.mubr.bf16.vlgmr.msra.gmra.mxu0 %v1499_v15  ;;  %v3956_v15 = vld [vmem:[%s4290_s1 + $0x30] sm:$0xff] }
0x15c0   :  { %v1534_v16 = vpop.f32.mrf.mxu0 }
0x15c1   :  { %v1540_v17 = vadd.f32 %v1534_v16, %v1000_v57 }
0x15c2   :  { %v2897_v18 = vpop.f32.mrf.mxu0 }
0x15c3   :  { %v2318_v19 = vmul.f32 -1.442695, %v1540_v17  ;;  %3094 = vtanh.f32 %v1540_v17 }
0x15c4   :  { %v1537_v30 = vpop.f32.mrf.mxu0 }
0x15c5   :  { %3096 = vpow2.f32 %v2318_v19  ;;  %v3975_v30 = vld [vmem:[%s4290_s1 + $0x38] sm:$0xff] }
0x15c6   :  { %v2898_v31 = vpop.f32.mrf.mxu0 }
0x15d0   :  { %v3095_v33 = vpop.eup %3094 }
0x15d1   :  { %1550 = vrot.lane.b32.xlu0 %v3095_v33, %s3106_s25 }
0x15d2   :  { %v3097_v48 = vpop.eup %3096 }
0x15d3   :  { %v1544_v58 = vadd.f32 1.0, %v3097_v48 }
0x15d5   :  { %3098 = vrcp.f32 %v1544_v58  ;;  %1726 = vperm.xlu0 %2931, %v1678_v28  }
0x15d9   :  { %1741 = vperm.xlu0 %2931, %v1689_v27  }
0x15e2   :  { %v3099_v51 = vpop.eup %3098 }
0x15e3   :  { %1548 = vrot.lane.b32.xlu1 %v3099_v51, %s3105_s24 }
0x15e7   :  { %1552 = vrot.lane.b32.xlu1 %v3099_v51, %s3104_s23 }
0x15eb   :  { %1731 = vperm.xlu1 %2932, %v1681_v52  }
0x15ef   :  { %1736 = vperm.xlu1 %2932, %v1686_v41  }
0x1643   :  { %v1551_v53 = vpop.permute.xlu0 %1550 }
0x1644   :  { %v1555_v43 = vmul.f32 %v3099_v51, %v1551_v53 }
0x1650   :  { %v1727_v59 = vpop.permute.xlu0 %1726 }
0x1651   :  { %v3888_v36 = vadd.f32 %v1727_v59, %v1716_v54 }
0x1653   :  { %1773 = vst.msk [vmem:[%s4291_s14] sm:$0xff] %vm1772_vm2, %v3888_v36  ;;  %v1955_v51 = vsel %vm1954_vm3, %v3888_v36, inf }
0x1654   :  { %v1742_v39 = vpop.permute.xlu0 %1741 }
0x1655   :  { %v3896_v40 = vadd.f32 %v1742_v39, %v1719_v37  ;;  %v1549_v42 = vpop.permute.xlu1 %1548  ;;  %v1963_v39 = vsel %vm1772_vm2, %v1955_v51, inf }
0x1656   :  { %v1554_v2 = vmul.f32 %v1549_v42, %v1495_v10  ;;  %v1794_v10 = vrot.slane %v3943_v9, %v1793_v26 }
0x1657   :  { %1776 = vst.msk [vmem:[%s4291_s14 + $0x18] sm:$0xff] %vm1772_vm2, %v3896_v40  ;;  %v1958_v52 = vsel %vm1954_vm3, %v3896_v40, inf }
0x1658   :  { %v1556_v44 = vadd.f32 %v1555_v43, %v1554_v2  ;;  %v1966_v43 = vsel %vm1772_vm2, %v1958_v52, inf }
0x1659   :  { %v1553_v45 = vpop.permute.xlu1 %1552 }
0x165a   :  { %3100 = vtanh.f32 %v1556_v44 }
0x1666   :  { %v1732_v46 = vpop.permute.xlu1 %1731 }
0x1667   :  { %v3101_v61 = vpop.eup %3100  ;;  %v3914_v62 = vadd.f32 %v1732_v46, %v1717_v55 }
0x1668   :  { %v1558_v8 = vmul.f32 %v3101_v61, %v1553_v45 }
0x1669   :  { %1774 = vst.msk [vmem:[%s4291_s14 + $0x8] sm:$0xff] %vm1772_vm2, %v3914_v62  ;;  %v1956_v33 = vsel %vm1954_vm3, %v3914_v62, inf }
0x166a   :  { %1559 = vst [vmem:[%s4287_s15 + $0x38] sm:$0xff] %v1558_v8  ;;  %v1737_v0 = vpop.permute.xlu1 %1736  ;;  %v1571_v1 = vpack.c.bf16 %v1558_v8, %v3855_v14  ;;  %v1964_v41 = vsel %vm1772_vm2, %v1956_v33, inf }
0x166b   :  { %v3926_v3 = vadd.f32 %v1737_v0, %v1718_v47  ;;  %v1786_v47 = vsub.s32 0, %v3937_v56 }
0x166c   :  { %2920 = vmatmul.mubr.bf16.gmra.mxu1 %v1571_v1  ;;  %v1800_v1 = vsub.s32 2, %v3937_v56 }
0x166d   :  { %1775 = vst.msk [vmem:[%s4291_s14 + $0x10] sm:$0xff] %vm1772_vm2, %v3926_v3  ;;  %v1957_v34 = vsel %vm1954_vm3, %v3926_v3, inf  ;;  %v1787_v0 = vrot.slane %v3943_v9, %v1786_v47 }
0x166e   :  { %v1965_v42 = vsel %vm1772_vm2, %v1957_v34, inf }
0x172c   :  { %v2921_v4 = vpop.f32.mrf.mxu1 }
0x172d   :  { %v1702_v38 = vadd.f32 %v2921_v4, %v3869_v49  ;;  %v1801_v4 = vrot.slane %v3943_v9, %v1800_v1  ;;  %v4078_v1 = vand.u32 127, %v1782_v23 }
0x172e   :  { %v1693_v5 = vpop.f32.mrf.mxu1 }
0x172f   :  { %v1694_v7 = vadd.f32 %v3869_v49, %v1693_v5  ;;  %v1722_v16 = vmul.f32 %v3956_v15, %v1702_v38  ;;  %v1807_v5 = vsub.s32 3, %v3937_v56 }
0x1730   :  { %v2922_v24 = vpop.f32.mrf.mxu1 }
0x1731   :  { %1746 = vperm.xlu1 %2932, %v1694_v7   ;;  %v1705_v11 = vadd.f32 %v2922_v24, %v3869_v49  ;;  %v1720_v12 = vmul.f32 %v3950_v13, %v1694_v7  ;;  %v1808_v7 = vrot.slane %v3943_v9, %v1807_v5 }
0x1732   :  { %v1696_v25 = vpop.f32.mrf.mxu1 }
0x1733   :  { %v1697_v21 = vadd.f32 %v3869_v49, %v1696_v25  ;;  %v1723_v6 = vmul.f32 %v3975_v30, %v1705_v11 }
0x1735   :  { %1756 = vperm.xlu1 %2932, %v1702_v38   ;;  %1751 = vperm.xlu0 %2931, %v1697_v21   ;;  %v1721_v17 = vmul.f32 %v3961_v63, %v1697_v21 }
0x1739   :  { %1761 = vperm.xlu0 %2931, %v1705_v11  }
0x173d   :  { %1796 = vbcast.lane.b32.xlu0 %v1794_v10, 256 }
0x17ac   :  { %v1747_v14 = vpop.permute.xlu1 %1746 }
0x17ad   :  { %v3963_v57 = vadd.f32 %v1747_v14, %v1720_v12  ;;  %v1989_v12 = vadd.f32 1.0, %v3926_v3  ;;  %v1987_v14 = vadd.f32 1.0, %v3888_v36 }
0x17af   :  { %1777 = vst.msk [vmem:[%s4291_s14 + $0x20] sm:$0xff] %vm1772_vm2, %v3963_v57  ;;  %v1959_v48 = vsel %vm1954_vm3, %v3963_v57, inf }
0x17b0   :  { %v1757_v18 = vpop.permute.xlu1 %1756  ;;  %v1752_v19 = vpop.permute.xlu0 %1751  ;;  %v1967_v53 = vsel %vm1772_vm2, %v1959_v48, inf }
0x17b1   :  { %v3977_v31 = vadd.f32 %v1757_v18, %v1722_v16  ;;  %v3979_v32 = vadd.f32 %v1752_v19, %v1721_v17  ;;  %v1968_v44 = vmin.f32 %v1963_v39, %v1967_v53  ;;  %v1991_v16 = vadd.f32 1.0, %v3963_v57 }
0x17b2   :  { %v1988_v17 = vadd.f32 1.0, %v3914_v62 }
0x17b3   :  { %1779 = vst.msk [vmem:[%s4291_s14 + $0x30] sm:$0xff] %vm1772_vm2, %v3977_v31  ;;  %1778 = vst.msk [vmem:[%s4291_s14 + $0x28] sm:$0xff] %vm1772_vm2, %v3979_v32  ;;  %v1960_v49 = vsel %vm1954_vm3, %v3979_v32, inf  ;;  %v1961_v28 = vsel %vm1954_vm3, %v3977_v31, inf }
0x17b4   :  { %v1762_v58 = vpop.permute.xlu0 %1761  ;;  %v1969_v50 = vsel %vm1772_vm2, %v1960_v49, inf  ;;  %v1971_v54 = vsel %vm1772_vm2, %v1961_v28, inf  ;;  %v1993_v49 = vadd.f32 1.0, %v3977_v31  ;;  %v1990_v28 = vadd.f32 1.0, %v3896_v40 }
0x17b5   :  { %v4006_v27 = vadd.f32 %v1762_v58, %v1723_v6  ;;  %v1970_v37 = vmin.f32 %v1964_v41, %v1969_v50  ;;  %v1972_v45 = vmin.f32 %v1965_v42, %v1971_v54 }
0x17b7   :  { %1780 = vst.msk [vmem:[%s4291_s14 + $0x38] sm:$0xff] %vm1772_vm2, %v4006_v27  ;;  %v1962_v59 = vsel %vm1954_vm3, %v4006_v27, inf  ;;  %v1975_v46 = vmin.f32 %v1968_v44, %v1970_v37 }
0x17b8   :  { %v1973_v2 = vsel %vm1772_vm2, %v1962_v59, inf  ;;  %v1992_v59 = vadd.f32 1.0, %v3979_v32 }
0x17b9   :  { %v1974_v55 = vmin.f32 %v1966_v43, %v1973_v2  ;;  %v1994_v43 = vadd.f32 1.0, %v4006_v27 }
0x17bb   :  { %v1976_v61 = vmin.f32 %v1972_v45, %v1974_v55 }
0x17bd   :  { %v1977_v8 = vmin.f32 %v1975_v46, %v1976_v61 }
0x17bf   :  { %1978 = vmin.xlane.f32.xlu1 %v1977_v8 }
0x17d0   :  { %1789 = vbcast.lane.b32.xlu1 %v1787_v0, 256 }
0x17d4   :  { %1803 = vbcast.lane.b32.xlu1 %v1801_v4, 256 }
0x17d8   :  { %1810 = vbcast.lane.b32.xlu1 %v1808_v7, 256 }
0x1848   :  { %v1979_v24 = vpop.xlane.xlu1 %1978 }
0x1849   :  { %v1980_v25 = vrot.slane %v1979_v24, 4 }
0x184b   :  { %v1981_v38 = vmin.f32 %v1979_v24, %v1980_v25 }
0x184c   :  { %v4069_v8 = vpop.permute.xlu1 %1789 }
0x184d   :  { %v1982_v21 = vrot.slane %v1981_v38, 2  ;;  %vm1840_vm13 = vcmp.eq.s32.totalorder %v4078_v1, %v4069_v8 }
0x184f   :  { %v1983_v26 = vmin.f32 %v1981_v38, %v1982_v21 }
0x1850   :  { %v4071_v47 = vpop.permute.xlu1 %1803 }
0x1851   :  { %v1984_v11 = vrot.slane %v1983_v26, 1  ;;  %vm1842_vm14 = vcmp.eq.s32.totalorder %v4078_v1, %v4071_v47 }
0x1853   :  { %v1985_v10 = vmin.f32 %v1983_v26, %v1984_v11 }
0x1854   :  { %v4075_v0 = vpop.permute.xlu1 %1810 }
0x1855   :  { %2923 = vpush %v1985_v10  ;;  %vm1843_vm15 = vcmp.eq.s32.totalorder %v4078_v1, %v4075_v0 }
0x1856   :  { %v2331_v8 = vsel %vm1843_vm15, 1.0, %v3102_v22  ;;  %vm1942_vm15 = vcmask 1044484  }
0x1886   :  { %s2924_s14 = spop %2923 }
0x1887   :  { %v1995_v18 = vstv %s2924_s14 }
0x1888   :  { %v1998_v19 = vsub.f32 %v1989_v12, %v1995_v18  ;;  %v1996_v33 = vsub.f32 %v1987_v14, %v1995_v18  ;;  %v2000_v6 = vsub.f32 %v1991_v16, %v1995_v18  ;;  %v1997_v48 = vsub.f32 %v1988_v17, %v1995_v18 }
0x1889   :  { %v2002_v51 = vsub.f32 %v1993_v49, %v1995_v18  ;;  %v1999_v34 = vsub.f32 %v1990_v28, %v1995_v18  ;;  %v2001_v37 = vsub.f32 %v1992_v59, %v1995_v18  ;;  %v2003_v44 = vsub.f32 %v1994_v43, %v1995_v18 }
0x188a   :  { %v2006_v58 = vmul.f32 %v1998_v19, %v3912_v29  ;;  %v2004_v50 = vmul.f32 %v1996_v33, %v3880_v60  ;;  %v2008_v53 = vmul.f32 %v2000_v6, %v3950_v13  ;;  %v2005_v54 = vmul.f32 %v1997_v48, %v3906_v20 }
0x188b   :  { %v2010_v60 = vmul.f32 %v2002_v51, %v3956_v15  ;;  %v2007_v42 = vmul.f32 %v1999_v34, %v3886_v35  ;;  %v2009_v2 = vmul.f32 %v2001_v37, %v3961_v63  ;;  %v4061_v55 = vmul.f32 %v2003_v44, %v3975_v30  ;;  %v4073_v30 = vpop.permute.xlu0 %1796 }
0x188c   :  { %v2018_v52 = vsel %vm1772_vm2, %v2006_v58, -inf  ;;  %v2012_v41 = vsel %vm1772_vm2, %v2004_v50, -inf  ;;  %v2024_v39 = vsel %vm1772_vm2, %v2008_v53, -inf  ;;  %v2015_v29 = vsel %vm1772_vm2, %v2005_v54, -inf }
0x188d   :  { %2019 = vmax.xlane.f32.xlu1 %v2018_v52  ;;  %2013 = vmax.xlane.f32.xlu0 %v2012_v41  ;;  %v2030_v13 = vsel %vm1772_vm2, %v2010_v60, -inf  ;;  %v2021_v20 = vsel %vm1772_vm2, %v2007_v42, -inf  ;;  %v2027_v45 = vsel %vm1772_vm2, %v2009_v2, -inf  ;;  %v2033_v35 = vsel %vm1772_vm2, %v4061_v55, -inf }
0x188e   :  { %v1821_v15 = vsub.s32 5, %v3937_v56  ;;  %v1814_v63 = vsub.s32 4, %v3937_v56  ;;  %v1835_v44 = vsub.s32 7, %v3937_v56  ;;  %vm1841_vm12 = vcmp.eq.s32.totalorder %v4078_v1, %v4073_v30 }
0x1890   :  { %v1822_v46 = vrot.slane %v3943_v9, %v1821_v15  ;;  %v1815_v61 = vrot.slane %v3943_v9, %v1814_v63  ;;  %v2329_v15 = vsel %vm1841_vm12, 1.0, %v3102_v22  ;;  %v2328_v63 = vsel %vm1840_vm13, 1.0, %v3102_v22 }
0x1891   :  { %2025 = vmax.xlane.f32.xlu1 %v2024_v39  ;;  %2016 = vmax.xlane.f32.xlu0 %v2015_v29  ;;  %v1864_v30 = vmul.f32 %v2328_v63, %v3888_v36  ;;  %vm1936_vm13 = vcmask 1041409  }
0x1893   :  { %v1872_v47 = vsel %vm1772_vm2, %v1864_v30, 0.0 }
0x1895   :  { %2031 = vmax.xlane.f32.xlu1 %v2030_v13  ;;  %2022 = vmax.xlane.f32.xlu0 %v2021_v20 }
0x1899   :  { %2028 = vmax.xlane.f32.xlu0 %v2027_v45  ;;  %v1836_v45 = vrot.slane %v3943_v9, %v1835_v44 }
0x189d   :  { %2034 = vmax.xlane.f32.xlu0 %v2033_v35 }
0x18a6   :  { %1824 = vbcast.lane.b32.xlu1 %v1822_v46, 256  ;;  %v1865_v46 = vmul.f32 %v2329_v15, %v3914_v62 }
0x18b3   :  { %1817 = vbcast.lane.b32.xlu0 %v1815_v61, 256  ;;  %v2330_v61 = vsel %vm1842_vm14, 1.0, %v3102_v22  ;;  %vm1938_vm14 = vcmask 1042434  }
0x1916   :  { %v2014_v4 = vpop.xlane.xlu0 %2013  ;;  %v2020_v5 = vpop.xlane.xlu1 %2019 }
0x1917   :  { %vm2036_vm4 = vcmp.eq.f32.partialorder %v2004_v50, %v2014_v4  ;;  %vm2038_vm5 = vcmp.eq.f32.partialorder %v2006_v58, %v2020_v5  ;;  %v1866_v4 = vmul.f32 %v2330_v61, %v3926_v3  ;;  %v1867_v5 = vmul.f32 %v2331_v8, %v3896_v40 }
0x1918   :  { %v2044_v7 = vsel %vm2036_vm4, %v4078_v1, 8  ;;  %v2046_v24 = vsel %vm2038_vm5, %v4078_v1, 8 }
0x1919   :  { %v4083_v25 = vsel %vm1772_vm2, %v2044_v7, 2147483647  ;;  %v4086_v38 = vsel %vm1772_vm2, %v2046_v24, 2147483647  ;;  %v1878_v62 = vsel %vm1772_vm2, %v1866_v4, 0.0  ;;  %v1881_v7 = vsel %vm1772_vm2, %v1867_v5, 0.0 }
0x191a   :  { %v2017_v21 = vpop.xlane.xlu0 %2016  ;;  %v2026_v26 = vpop.xlane.xlu1 %2025  ;;  %v2054_v11 = vshra.s32 %v4083_v25, 16  ;;  %v2084_v23 = vshra.s32 %v4086_v38, 16  ;;  %v2053_v24 = vand.u32 65535, %v4083_v25  ;;  %v2083_v36 = vand.u32 65535, %v4086_v38 }
0x191b   :  { %vm2037_vm6 = vcmp.eq.f32.partialorder %v2005_v54, %v2017_v21  ;;  %vm2040_vm7 = vcmp.eq.f32.partialorder %v2008_v53, %v2026_v26 }
0x191c   :  { %v2045_v10 = vsel %vm2037_vm6, %v4078_v1, 8  ;;  %v2048_v12 = vsel %vm2040_vm7, %v4078_v1, 8  ;;  %v4092_v14 = vcvt.s32.f32 %v2054_v11  ;;  %v4102_v6 = vcvt.s32.f32 %v2084_v23 }
0x191d   :  { %v4095_v16 = vsel %vm1772_vm2, %v2045_v10, 2147483647  ;;  %v4098_v17 = vsel %vm1772_vm2, %v2048_v12, 2147483647  ;;  %v2055_v26 = vcvt.s32.f32 %v2053_v24  ;;  %v2085_v23 = vcvt.s32.f32 %v2083_v36 }
0x191e   :  { %2057 = vmin.xlane.f32.xlu1 %v4092_v14  ;;  %v2023_v18 = vpop.xlane.xlu0 %2022  ;;  %v2032_v19 = vpop.xlane.xlu1 %2031  ;;  %v2069_v33 = vshra.s32 %v4095_v16, 16  ;;  %v2114_v58 = vshra.s32 %v4098_v17, 16  ;;  %v2068_v11 = vand.u32 65535, %v4095_v16  ;;  %v2113_v10 = vand.u32 65535, %v4098_v17 }
0x191f   :  { %vm2039_vm8 = vcmp.eq.f32.partialorder %v2007_v42, %v2023_v18  ;;  %vm2042_vm9 = vcmp.eq.f32.partialorder %v2010_v60, %v2032_v19 }
0x1920   :  { %v2047_v48 = vsel %vm2039_vm8, %v4078_v1, 8  ;;  %v2050_v49 = vsel %vm2042_vm9, %v4078_v1, 8  ;;  %v4106_v28 = vcvt.s32.f32 %v2069_v33  ;;  %v4121_v54 = vcvt.s32.f32 %v2114_v58 }
0x1921   :  { %v4110_v50 = vsel %vm1772_vm2, %v2047_v48, 2147483647  ;;  %v4113_v51 = vsel %vm1772_vm2, %v2050_v49, 2147483647  ;;  %v2070_v12 = vcvt.s32.f32 %v2068_v11  ;;  %v2115_v58 = vcvt.s32.f32 %v2113_v10 }
0x1922   :  { %2072 = vmin.xlane.f32.xlu0 %v4106_v28  ;;  %v2029_v34 = vpop.xlane.xlu0 %2028  ;;  %2087 = vmin.xlane.f32.xlu1 %v4102_v6  ;;  %v2099_v52 = vshra.s32 %v4110_v50, 16  ;;  %v2144_v59 = vshra.s32 %v4113_v51, 16  ;;  %v1825_v0 = vpop.permute.xlu1 %1824  ;;  %v2098_v18 = vand.u32 65535, %v4110_v50 }
0x1923   :  { %vm2041_vm10 = vcmp.eq.f32.partialorder %v2009_v2, %v2029_v34  ;;  %vm1845_vm1 = vcmp.eq.s32.totalorder %v4078_v1, %v1825_v0 }
0x1924   :  { %v2049_v41 = vsel %vm2041_vm10, %v4078_v1, 8  ;;  %v4119_v53 = vcvt.s32.f32 %v2099_v52  ;;  %v4134_v43 = vcvt.s32.f32 %v2144_v59  ;;  %v2333_v17 = vsel %vm1845_vm1, 1.0, %v3102_v22 }
0x1925   :  { %v4125_v37 = vsel %vm1772_vm2, %v2049_v41, 2147483647  ;;  %v2100_v49 = vcvt.s32.f32 %v2098_v18  ;;  %v1869_v50 = vmul.f32 %v2333_v17, %v3979_v32  ;;  %vm1944_vm1 = vcmask 1045509  }
0x1926   :  { %2102 = vmin.xlane.f32.xlu0 %v4119_v53  ;;  %v2035_v39 = vpop.xlane.xlu0 %2034  ;;  %2117 = vmin.xlane.f32.xlu1 %v4121_v54  ;;  %v2129_v29 = vshra.s32 %v4125_v37, 16  ;;  %v2128_v59 = vand.u32 65535, %v4125_v37 }
0x1927   :  { %vm2043_vm11 = vcmp.eq.f32.partialorder %v4061_v55, %v2035_v39  ;;  %v1828_v55 = vsub.s32 6, %v3937_v56  ;;  %v1887_v39 = vsel %vm1772_vm2, %v1869_v50, 0.0 }
0x1928   :  { %v2051_v60 = vsel %vm2043_vm11, %v4078_v1, 8  ;;  %v4132_v42 = vcvt.s32.f32 %v2129_v29 }
0x1929   :  { %v4137_v13 = vsel %vm1772_vm2, %v2051_v60, 2147483647  ;;  %v1829_v35 = vrot.slane %v3943_v9, %v1828_v55  ;;  %v1875_v9 = vsel %vm1772_vm2, %v1865_v46, 0.0 }
0x192a   :  { %2132 = vmin.xlane.f32.xlu0 %v4132_v42  ;;  %2147 = vmin.xlane.f32.xlu1 %v4134_v43  ;;  %v2159_v20 = vshra.s32 %v4137_v13, 16  ;;  %v1818_v3 = vpop.permute.xlu0 %1817  ;;  %v2158_v44 = vand.u32 65535, %v4137_v13 }
0x192b   :  { %vm1844_vm3 = vcmp.eq.s32.totalorder %v4078_v1, %v1818_v3 }
0x192c   :  { %v4142_v2 = vcvt.s32.f32 %v2159_v20  ;;  %v2332_v19 = vsel %vm1844_vm3, 1.0, %v3102_v22  ;;  %vm1946_vm3 = vcmask 1046534  }
0x192d   :  { %v1868_v34 = vmul.f32 %v2332_v19, %v3963_v57  ;;  %v2130_v57 = vcvt.s32.f32 %v2128_v59 }
0x192e   :  { %2162 = vmin.xlane.f32.xlu0 %v4142_v2 }
0x193b   :  { %1838 = vbcast.lane.b32.xlu1 %v1836_v45, 256 }
0x1944   :  { %1831 = vbcast.lane.b32.xlu0 %v1829_v35, 256 }
0x195f   :  { %1876 = vadd.xlane.f32.xlu1 %v1875_v9 }
0x1963   :  { %1873 = vadd.xlane.f32.xlu0 %v1872_v47  ;;  %1879 = vadd.xlane.f32.xlu1 %v1878_v62 }
0x1967   :  { %1882 = vadd.xlane.f32.xlu1 %v1881_v7 }
0x19a7   :  { %v4171_v21 = vpop.xlane.xlu1 %2057 }
0x19a8   :  { %vm2059_vm0 = vcmp.eq.f32.partialorder %v4092_v14, %v4171_v21 }
0x19a9   :  { %v2060_v40 = vsel %vm2059_vm0, %v2055_v26, inf  ;;  %v4236_v26 = vsub.s32 %v4078_v1, %v3937_v56  ;;  %vm1940_vm0 = vcmask 1043459  }
0x19aa   :  { %2061 = vmin.xlane.f32.xlu0 %v2060_v40 }
0x19ab   :  { %v4179_v25 = vpop.xlane.xlu0 %2072  ;;  %v4181_v38 = vpop.xlane.xlu1 %2087 }
0x19ac   :  { %vm2074_vm4 = vcmp.eq.f32.partialorder %v4106_v28, %v4179_v25  ;;  %vm2089_vm5 = vcmp.eq.f32.partialorder %v4102_v6, %v4181_v38  ;;  %v2079_v30 = vcvt.f32.s32 %v4179_v25  ;;  %v2094_v4 = vcvt.f32.s32 %v4181_v38 }
0x19ad   :  { %v2075_v14 = vsel %vm2074_vm4, %v2070_v12, inf  ;;  %v2090_v16 = vsel %vm2089_vm5, %v2085_v23, inf  ;;  %vm1948_vm4 = vcmask 1047559  }
0x19ae   :  { %2076 = vmin.xlane.f32.xlu1 %v2075_v14  ;;  %2091 = vmin.xlane.f32.xlu0 %v2090_v16  ;;  %v2080_v24 = vshll.u32 %v2079_v30, 16  ;;  %v2095_v36 = vshll.u32 %v2094_v4, 16 }
0x19af   :  { %v4190_v33 = vpop.xlane.xlu0 %2102  ;;  %v4192_v48 = vpop.xlane.xlu1 %2117 }
0x19b0   :  { %vm2104_vm6 = vcmp.eq.f32.partialorder %v4119_v53, %v4190_v33  ;;  %vm2119_vm7 = vcmp.eq.f32.partialorder %v4121_v54, %v4192_v48  ;;  %v1884_v53 = vsel %vm1772_vm2, %v1868_v34, 0.0  ;;  %v2143_v54 = vand.u32 65535, %v4113_v51 }
0x19b1   :  { %v2105_v6 = vsel %vm2104_vm6, %v2100_v49, inf  ;;  %v2120_v28 = vsel %vm2119_vm7, %v2115_v58, inf  ;;  %v2124_v62 = vcvt.f32.s32 %v4192_v48 }
0x19b2   :  { %2106 = vmin.xlane.f32.xlu0 %v2105_v6  ;;  %2121 = vmin.xlane.f32.xlu1 %v2120_v28  ;;  %v2145_v20 = vcvt.s32.f32 %v2143_v54 }
0x19b3   :  { %v4200_v52 = vpop.xlane.xlu0 %2132  ;;  %v4202_v41 = vpop.xlane.xlu1 %2147  ;;  %v2125_v10 = vshll.u32 %v2124_v62, 16 }
0x19b4   :  { %vm2134_vm8 = vcmp.eq.f32.partialorder %v4132_v42, %v4200_v52  ;;  %vm2149_vm9 = vcmp.eq.f32.partialorder %v4134_v43, %v4202_v41  ;;  %v2160_v43 = vcvt.s32.f32 %v2158_v44  ;;  %v2139_v49 = vcvt.f32.s32 %v4200_v52 }
0x19b5   :  { %v2135_v60 = vsel %vm2134_vm8, %v2130_v57, inf  ;;  %v2150_v45 = vsel %vm2149_vm9, %v2145_v20, inf  ;;  %v2154_v50 = vcvt.f32.s32 %v4202_v41 }
0x19b6   :  { %1888 = vadd.xlane.f32.xlu0 %v1887_v39  ;;  %1885 = vadd.xlane.f32.xlu1 %v1884_v53  ;;  %v2140_v39 = vshll.u32 %v2139_v49, 16 }
0x19b7   :  { %v4209_v32 = vpop.xlane.xlu0 %2162  ;;  %v1839_v29 = vpop.permute.xlu1 %1838 }
0x19b8   :  { %vm1847_vm10 = vcmp.eq.s32.totalorder %v4078_v1, %v1839_v29  ;;  %vm2164_vm12 = vcmp.eq.f32.partialorder %v4142_v2, %v4209_v32 }
0x19b9   :  { %v2335_v55 = vsel %vm1847_vm10, 1.0, %v3102_v22  ;;  %v2165_v15 = vsel %vm2164_vm12, %v2160_v43, inf }
0x19ba   :  { %2136 = vmin.xlane.f32.xlu0 %v2135_v60  ;;  %v1871_v13 = vmul.f32 %v2335_v55, %v4006_v27  ;;  %v2109_v27 = vcvt.f32.s32 %v4190_v33  ;;  %v2155_v60 = vshll.u32 %v2154_v50, 16 }
0x19bb   :  { %v1832_v37 = vpop.permute.xlu0 %1831 }
0x19bc   :  { %vm1846_vm11 = vcmp.eq.s32.totalorder %v4078_v1, %v1832_v37  ;;  %v1893_v46 = vsel %vm1772_vm2, %v1871_v13, 0.0  ;;  %v2110_v23 = vshll.u32 %v2109_v27, 16  ;;  %v2169_v37 = vcvt.f32.s32 %v4209_v32 }
0x19bd   :  { %v2334_v42 = vsel %vm1846_vm11, 1.0, %v3102_v22 }
0x19be   :  { %2151 = vmin.xlane.f32.xlu0 %v2150_v45  ;;  %v1870_v51 = vmul.f32 %v2334_v42, %v3977_v31  ;;  %v2064_v31 = vcvt.f32.s32 %v4171_v21  ;;  %v2170_v32 = vshll.u32 %v2169_v37, 16 }
0x19c0   :  { %v1890_v35 = vsel %vm1772_vm2, %v1870_v51, 0.0  ;;  %v2065_v47 = vshll.u32 %v2064_v31, 16 }
0x19c1   :  { %1891 = vadd.xlane.f32.xlu1 %v1890_v35 }
0x19c2   :  { %2166 = vmin.xlane.f32.xlu0 %v2165_v15 }
0x19c6   :  { %1894 = vadd.xlane.f32.xlu0 %v1893_v46 }
0x19e8   :  { %v1877_v63 = vpop.xlane.xlu1 %1876 }
0x19e9   :  { %v1911_v54 = vrot.slane %v1877_v63, %v4236_v26 }
0x19ec   :  { %v4225_v61 = vpop.xlane.xlu1 %1879  ;;  %v1874_v22 = vpop.xlane.xlu0 %1873 }
0x19ed   :  { %v1907_v53 = vrot.slane %v1874_v22, %v4236_v26  ;;  %v1915_v20 = vrot.slane %v4225_v61, %v4236_v26 }
0x19ef   :  { %v1937_v41 = vsel %vm1936_vm13, %v1911_v54, %v1907_v53 }
0x19f0   :  { %v4228_v9 = vpop.xlane.xlu1 %1882  ;;  %v1939_v13 = vsel %vm1938_vm14, %v1915_v20, %v1937_v41 }
0x19f1   :  { %v1919_v42 = vrot.slane %v4228_v9, %v4236_v26 }
0x19f3   :  { %v1941_v63 = vsel %vm1940_vm0, %v1919_v42, %v1939_v13 }
0x1a33   :  { %v2062_v2 = vpop.xlane.xlu0 %2061 }
0x1a34   :  { %v2063_v8 = vcvt.f32.s32 %v2062_v2 }
0x1a36   :  { %v2066_v5 = vadd.s32 %v2065_v47, %v2063_v8 }
0x1a37   :  { %v2092_v7 = vpop.xlane.xlu0 %2091  ;;  %v2077_v0 = vpop.xlane.xlu1 %2076 }
0x1a38   :  { %v2093_v3 = vcvt.f32.s32 %v2092_v7  ;;  %v2078_v21 = vcvt.f32.s32 %v2077_v0  ;;  %v2175_v25 = vrot.slane %v2066_v5, %v4236_v26 }
0x1a3a   :  { %v2096_v11 = vadd.s32 %v2095_v36, %v2093_v3  ;;  %v2081_v40 = vadd.s32 %v2080_v24, %v2078_v21 }
0x1a3b   :  { %v2107_v38 = vpop.xlane.xlu0 %2106  ;;  %v2122_v12 = vpop.xlane.xlu1 %2121 }
0x1a3c   :  { %v2183_v18 = vrot.slane %v2096_v11, %v4236_v26  ;;  %v2179_v14 = vrot.slane %v2081_v40, %v4236_v26  ;;  %v2108_v16 = vcvt.f32.s32 %v2107_v38  ;;  %v2123_v17 = vcvt.f32.s32 %v2122_v12 }
0x1a3e   :  { %v2204_v19 = vsel %vm1936_vm13, %v2179_v14, %v2175_v25  ;;  %v2111_v56 = vadd.s32 %v2110_v23, %v2108_v16  ;;  %v2126_v1 = vadd.s32 %v2125_v10, %v2123_v17 }
0x1a3f   :  { %v2205_v33 = vsel %vm1938_vm14, %v2183_v18, %v2204_v19  ;;  %v1889_v48 = vpop.xlane.xlu0 %1888  ;;  %v1886_v52 = vpop.xlane.xlu1 %1885 }
0x1a40   :  { %v2187_v58 = vrot.slane %v2111_v56, %v4236_v26  ;;  %v2191_v6 = vrot.slane %v2126_v1, %v4236_v26  ;;  %v1923_v51 = vrot.slane %v1886_v52, %v4236_v26  ;;  %v1927_v61 = vrot.slane %v1889_v48, %v4236_v26 }
0x1a42   :  { %v2206_v28 = vsel %vm1940_vm0, %v2187_v58, %v2205_v33  ;;  %v1943_v9 = vsel %vm1942_vm15, %v1923_v51, %v1941_v63 }
0x1a43   :  { %v2207_v34 = vsel %vm1942_vm15, %v2191_v6, %v2206_v28  ;;  %v2137_v59 = vpop.xlane.xlu0 %2136  ;;  %v1945_v47 = vsel %vm1944_vm1, %v1927_v61, %v1943_v9 }
0x1a44   :  { %v2138_v57 = vcvt.f32.s32 %v2137_v59 }
0x1a46   :  { %v2141_v29 = vadd.s32 %v2140_v39, %v2138_v57 }
0x1a47   :  { %v2152_v44 = vpop.xlane.xlu0 %2151 }
0x1a48   :  { %v2195_v45 = vrot.slane %v2141_v29, %v4236_v26  ;;  %v2153_v55 = vcvt.f32.s32 %v2152_v44 }
0x1a4a   :  { %v2208_v43 = vsel %vm1944_vm1, %v2195_v45, %v2207_v34  ;;  %v2156_v35 = vadd.s32 %v2155_v60, %v2153_v55  ;;  %v1892_v15 = vpop.xlane.xlu1 %1891 }
0x1a4b   :  { %v2167_v46 = vpop.xlane.xlu0 %2166  ;;  %v1931_v2 = vrot.slane %v1892_v15, %v4236_v26 }
0x1a4c   :  { %v2199_v22 = vrot.slane %v2156_v35, %v4236_v26  ;;  %v2168_v31 = vcvt.f32.s32 %v2167_v46 }
0x1a4d   :  { %v1947_v5 = vsel %vm1946_vm3, %v1931_v2, %v1945_v47 }
0x1a4e   :  { %v2209_v30 = vsel %vm1946_vm3, %v2199_v22, %v2208_v43  ;;  %v2171_v4 = vadd.s32 %v2170_v32, %v2168_v31 }
0x1a4f   :  { %v1895_v8 = vpop.xlane.xlu0 %1894 }
0x1a50   :  { %v2203_v27 = vrot.slane %v2171_v4, %v4236_v26  ;;  %v1935_v62 = vrot.slane %v1895_v8, %v4236_v26 }
0x1a52   :  { %v1949_v7 = vsel %vm1948_vm4, %v1935_v62, %v1947_v5  ;;  %v2210_v0 = vsel %vm1948_vm4, %v2203_v27, %v2209_v30 }
0x1a53   :  { %1951 = vst.msk [vmem:[%s4293_s12] sm:$0xff] %vm1772_vm2, %v1949_v7  ;;  %2211 = vst.msk [vmem:[%s4294_s13] sm:$0xff] %vm1772_vm2, %v2210_v0 }

</bundles_post_ra>
